<compile_context>
chip_gen: v7x
topology: tpu7x:2x2x1
jax: 0.10.0
libtpu: 0.0.40
codegen_flags: <defaults>
</compile_context>

<pallas_src>
import functools
import math

import jax
import jax.numpy as jnp
from jax import lax
from jax.experimental import pallas as pl
from jax.experimental.pallas import tpu as pltpu

# ---- model hyper-parameters (small, consistent with the module) ----
D_MODEL = 32
N_HEADS = 4
N_LAYERS = 2
INPUT_LEN = 8
OUTPUT_DIM = 5
VOCAB_SIZE = 50
LN_EPS = 1e-5          # PyTorch nn.LayerNorm default
BATCH = 2

VOCAB_PAD = 128        # pad vocab rows -> lane-aligned one-hot embedding matmul
HEAD_PAD = 128         # pad classifier lanes -> lane-dense output store
NEG_INF = -1e30


def _layer_norm(x, gamma, beta):
    mu = jnp.mean(x, axis=-1, keepdims=True)
    var = jnp.mean((x - mu) ** 2, axis=-1, keepdims=True)
    return (x - mu) * lax.rsqrt(var + LN_EPS) * gamma + beta


# ----------------------------------------------------------------------------
# Single fused Pallas kernel: full forward pass
# ----------------------------------------------------------------------------
def fused_forward_kernel(tok_ref, emb_ref, pe_ref, mask_ref, pool_ref,
                         ln1_w_ref, ln1_b_ref,
                         wq_ref, bq_ref, wk_ref, bk_ref, wv_ref, bv_ref,
                         wo_ref, bo_ref,
                         ln2_w_ref, ln2_b_ref,
                         w1_ref, b1_ref, w2_ref, b2_ref,
                         head_w_ref, head_b_ref,
                         o_ref, *, n_layers, n_heads):
    rows, d = pe_ref.shape            # (B*S, D)
    hd = d // n_heads

    # ---- embedding gather (one-hot matmul) + positional encoding ----
    tok = tok_ref[...]                                            # (rows, 1) i32
    vocab_iota = lax.broadcasted_iota(jnp.int32, (rows, emb_ref.shape[0]), 1)
    onehot = (vocab_iota == tok).astype(jnp.float32)              # (rows, V_pad)
    x = jnp.dot(onehot, emb_ref[...], preferred_element_type=jnp.float32)
    x = x + pe_ref[...]

    attn_mask = mask_ref[...]          # (rows, rows) additive causal+segment mask
    lane = lax.broadcasted_iota(jnp.int32, (1, d), 1)

    for l in range(n_layers):          # static unroll over the 2 layers
        # ---- pre-LN + causal multi-head self-attention (PyTorch MHA) ----
        a_in = _layer_norm(x, ln1_w_ref[l], ln1_b_ref[l])
        # 1/sqrt(head_dim) is folded into wq / bq host-side.
        q = jnp.dot(a_in, wq_ref[l], preferred_element_type=jnp.float32) + bq_ref[l]
        k = jnp.dot(a_in, wk_ref[l], preferred_element_type=jnp.float32) + bk_ref[l]
        v = jnp.dot(a_in, wv_ref[l], preferred_element_type=jnp.float32) + bv_ref[l]

        att = jnp.zeros((rows, d), jnp.float32)
        for h in range(n_heads):       # static; heads via lane masks, no concat
            hsel = (lane >= h * hd) & (lane < (h + 1) * hd)       # (1, D) bool
            qh = jnp.where(hsel, q, 0.0)
            vh = jnp.where(hsel, v, 0.0)
            # scores = qh @ k.T (NT contraction), full-D contract; masked lanes
            # of qh contribute zero, so this is exactly the per-head score.
            s = lax.dot_general(qh, k, (((1,), (1,)), ((), ())),
                                preferred_element_type=jnp.float32)
            s = s + attn_mask
            s = s - jnp.max(s, axis=-1, keepdims=True)
            p = jnp.exp(s)
            p = p * pl.reciprocal(jnp.sum(p, axis=-1, keepdims=True), approx=True)
            # head output lands in its own lanes; sum over heads == concat.
            att = att + jnp.dot(p, vh, preferred_element_type=jnp.float32)
        att = jnp.dot(att, wo_ref[l], preferred_element_type=jnp.float32) + bo_ref[l]
        # TODO(synk): Dropout(0.1) treated as identity (inference / eval mode).
        x = x + att

        # ---- pre-LN + feed-forward ----
        f_in = _layer_norm(x, ln2_w_ref[l], ln2_b_ref[l])
        h1 = jnp.dot(f_in, w1_ref[l], preferred_element_type=jnp.float32) + b1_ref[l]
        h1 = jnp.maximum(h1, 0.0)
        ff = jnp.dot(h1, w2_ref[l], preferred_element_type=jnp.float32) + b2_ref[l]
        x = x + ff

    # ---- mean-pool over sequence (1/S folded into pool matrix) + head ----
    pooled = jnp.dot(pool_ref[...], x, preferred_element_type=jnp.float32)  # (B, D)
    o_ref[...] = (jnp.dot(pooled, head_w_ref[...],
                          preferred_element_type=jnp.float32) + head_b_ref[...])


def classification_transformer_forward(tokens, params):
    """Full forward pass in a single fused pallas_call (single grid step)."""
    B, S = tokens.shape
    p = params
    kernel = functools.partial(fused_forward_kernel,
                               n_layers=N_LAYERS, n_heads=N_HEADS)
    logits_pad = pl.pallas_call(
        kernel,
        out_shape=jax.ShapeDtypeStruct((B, HEAD_PAD), jnp.float32),
        compiler_params=pltpu.CompilerParams(vmem_limit_bytes=32 * 1024 * 1024),
    )(
        tokens.reshape(B * S, 1).astype(jnp.int32),
        p["emb"], p["pe"], p["attn_mask"], p["pool"],
        p["ln1_w"], p["ln1_b"],
        p["wq"], p["bq"], p["wk"], p["bk"], p["wv"], p["bv"],
        p["wo"], p["bo"],
        p["ln2_w"], p["ln2_b"],
        p["w1"], p["b1"], p["w2"], p["b2"],
        p["head_w"], p["head_b"],
    )
    return logits_pad[:, :OUTPUT_DIM]


# ----------------------------------------------------------------------------
# Parameter construction (PyTorch layout) + host-side packing for the kernel
# ----------------------------------------------------------------------------
def make_positional_encoding(input_len, d_model):
    pos = jnp.arange(input_len, dtype=jnp.float32)[:, None]
    div_term = jnp.exp(jnp.arange(0, d_model, 2, dtype=jnp.float32)
                       * (-math.log(10000.0) / d_model))
    pe = jnp.zeros((input_len, d_model), jnp.float32)
    pe = pe.at[:, 0::2].set(jnp.sin(pos * div_term))
    pe = pe.at[:, 1::2].set(jnp.cos(pos * div_term))
    return pe


def init_torch_layout_params(key):
    """Synthetic parameters in the PyTorch module's native layout."""
    keys = jax.random.split(key, 2 + N_LAYERS)
    params = {
        "embedding": jax.random.normal(keys[0], (VOCAB_SIZE, D_MODEL),
                                       jnp.float32) * 0.02,
        "out_w": jax.random.normal(keys[1], (OUTPUT_DIM, D_MODEL),
                                   jnp.float32) * 0.1,
        "out_b": jnp.zeros((OUTPUT_DIM,), jnp.float32),
        "blocks": [],
    }
    for l in range(N_LAYERS):
        bk = jax.random.split(keys[2 + l], 4)
        params["blocks"].append({
            "ln1_w": jnp.ones((D_MODEL,), jnp.float32),
            "ln1_b": jnp.zeros((D_MODEL,), jnp.float32),
            "in_proj_w": jax.random.normal(bk[0], (3 * D_MODEL, D_MODEL),
                                           jnp.float32) * 0.1,
            "in_proj_b": jnp.zeros((3 * D_MODEL,), jnp.float32),
            "out_proj_w": jax.random.normal(bk[1], (D_MODEL, D_MODEL),
                                            jnp.float32) * 0.1,
            "out_proj_b": jnp.zeros((D_MODEL,), jnp.float32),
            "ln2_w": jnp.ones((D_MODEL,), jnp.float32),
            "ln2_b": jnp.zeros((D_MODEL,), jnp.float32),
            "w1": jax.random.normal(bk[2], (4 * D_MODEL, D_MODEL),
                                    jnp.float32) * 0.1,
            "b1": jnp.zeros((4 * D_MODEL,), jnp.float32),
            "w2": jax.random.normal(bk[3], (D_MODEL, 4 * D_MODEL),
                                    jnp.float32) * 0.1,
            "b2": jnp.zeros((D_MODEL,), jnp.float32),
        })
    return params


def pack_params(tparams, batch, seq):
    """Host-side re-layout: pre-transpose weights, fold 1/sqrt(hd) into Q,
    stack per-layer weights on a leading axis, pad vocab/classifier lanes and
    precompute the additive causal+segment mask, tiled PE and pool matrix."""
    D = D_MODEL
    hd = D // N_HEADS
    scale = 1.0 / math.sqrt(hd)

    def stack(fn):
        return jnp.stack([fn(b) for b in tparams["blocks"]], axis=0)

    rows = batch * seq
    r = jnp.arange(rows)
    same_batch = (r[:, None] // seq) == (r[None, :] // seq)
    causal = (r[None, :] % seq) <= (r[:, None] % seq)
    attn_mask = jnp.where(same_batch & causal, 0.0, NEG_INF).astype(jnp.float32)

    pool = jnp.zeros((batch, rows), jnp.float32).at[r // seq, r].set(1.0 / seq)

    return {
        "emb": jnp.zeros((VOCAB_PAD, D), jnp.float32).at[:VOCAB_SIZE].set(
            tparams["embedding"]),
        "pe": jnp.tile(make_positional_encoding(seq, D), (batch, 1)),
        "attn_mask": attn_mask,
        "pool": pool,
        "ln1_w": stack(lambda b: b["ln1_w"].reshape(1, D)),
        "ln1_b": stack(lambda b: b["ln1_b"].reshape(1, D)),
        "wq": stack(lambda b: b["in_proj_w"][:D].T * scale),
        "bq": stack(lambda b: (b["in_proj_b"][:D] * scale).reshape(1, D)),
        "wk": stack(lambda b: b["in_proj_w"][D:2 * D].T),
        "bk": stack(lambda b: b["in_proj_b"][D:2 * D].reshape(1, D)),
        "wv": stack(lambda b: b["in_proj_w"][2 * D:].T),
        "bv": stack(lambda b: b["in_proj_b"][2 * D:].reshape(1, D)),
        "wo": stack(lambda b: b["out_proj_w"].T),
        "bo": stack(lambda b: b["out_proj_b"].reshape(1, D)),
        "ln2_w": stack(lambda b: b["ln2_w"].reshape(1, D)),
        "ln2_b": stack(lambda b: b["ln2_b"].reshape(1, D)),
        "w1": stack(lambda b: b["w1"].T),
        "b1": stack(lambda b: b["b1"].reshape(1, 4 * D)),
        "w2": stack(lambda b: b["w2"].T),
        "b2": stack(lambda b: b["b2"].reshape(1, D)),
        "head_w": jnp.zeros((D, HEAD_PAD), jnp.float32).at[:, :OUTPUT_DIM].set(
            tparams["out_w"].T),
        "head_b": jnp.zeros((1, HEAD_PAD), jnp.float32).at[0, :OUTPUT_DIM].set(
            tparams["out_b"]),
    }


if __name__ == "__main__":
    key = jax.random.PRNGKey(0)
    tok_key, param_key = jax.random.split(key)
    tokens = jax.random.randint(tok_key, (BATCH, INPUT_LEN), 0, VOCAB_SIZE,
                                dtype=jnp.int32)
    tparams = init_torch_layout_params(param_key)
    params = pack_params(tparams, BATCH, INPUT_LEN)

    logits = classification_transformer_forward(tokens, params)
    logits = jax.block_until_ready(logits)

    assert logits.shape == (BATCH, OUTPUT_DIM), logits.shape
    assert bool(jnp.all(jnp.isfinite(logits)))
    print("KERNEL_OK")
</pallas_src>

<mosaic_0001>
module attributes {stable_mosaic.version = 11 : i64} {
  func.func @fused_forward_kernel(%arg0: memref<16x1xi32, #tpu.memory_space<vmem>>, %arg1: memref<128x32xf32, #tpu.memory_space<vmem>>, %arg2: memref<16x32xf32, #tpu.memory_space<vmem>>, %arg3: memref<16x16xf32, #tpu.memory_space<vmem>>, %arg4: memref<2x16xf32, #tpu.memory_space<vmem>>, %arg5: memref<2x1x32xf32, #tpu.memory_space<vmem>>, %arg6: memref<2x1x32xf32, #tpu.memory_space<vmem>>, %arg7: memref<2x32x32xf32, #tpu.memory_space<vmem>>, %arg8: memref<2x1x32xf32, #tpu.memory_space<vmem>>, %arg9: memref<2x32x32xf32, #tpu.memory_space<vmem>>, %arg10: memref<2x1x32xf32, #tpu.memory_space<vmem>>, %arg11: memref<2x32x32xf32, #tpu.memory_space<vmem>>, %arg12: memref<2x1x32xf32, #tpu.memory_space<vmem>>, %arg13: memref<2x32x32xf32, #tpu.memory_space<vmem>>, %arg14: memref<2x1x32xf32, #tpu.memory_space<vmem>>, %arg15: memref<2x1x32xf32, #tpu.memory_space<vmem>>, %arg16: memref<2x1x32xf32, #tpu.memory_space<vmem>>, %arg17: memref<2x32x128xf32, #tpu.memory_space<vmem>>, %arg18: memref<2x1x128xf32, #tpu.memory_space<vmem>>, %arg19: memref<2x128x32xf32, #tpu.memory_space<vmem>>, %arg20: memref<2x1x32xf32, #tpu.memory_space<vmem>>, %arg21: memref<32x128xf32, #tpu.memory_space<vmem>>, %arg22: memref<1x128xf32, #tpu.memory_space<vmem>>, %arg23: memref<2x128xf32, #tpu.memory_space<vmem>>) attributes {dimension_semantics = [], scalar_prefetch = 0 : i64, scratch_operands = 0 : i64, tpu.core_type = #tpu.core_type<tc>} {
    %c0 = arith.constant 0 : index
    %c0_0 = arith.constant 0 : index
    %0 = vector.load %arg0[%c0, %c0_0] : memref<16x1xi32, #tpu.memory_space<vmem>>, vector<16x1xi32>
    %1 = tpu.iota {dimensions = array<i32: 1>} : vector<16x128xi32>
    %2 = vector.broadcast %0 : vector<16x1xi32> to vector<16x128xi32>
    %3 = arith.cmpi eq, %1, %2 : vector<16x128xi32>
    %4 = arith.extui %3 : vector<16x128xi1> to vector<16x128xi32>
    %5 = arith.sitofp %4 : vector<16x128xi32> to vector<16x128xf32>
    %c0_1 = arith.constant 0 : index
    %c0_2 = arith.constant 0 : index
    %6 = vector.load %arg1[%c0_1, %c0_2] : memref<128x32xf32, #tpu.memory_space<vmem>>, vector<128x32xf32>
    %cst = arith.constant dense<0.000000e+00> : vector<16x32xf32>
    %7 = tpu.matmul %5, %6, %cst {dimension_numbers = #tpu.dot_dimension_numbers<[1], [0], [0], [1], [0, 0, 1, 1], [], []>} : vector<16x128xf32>, vector<128x32xf32>, vector<16x32xf32> -> vector<16x32xf32>
    %c0_3 = arith.constant 0 : index
    %c0_4 = arith.constant 0 : index
    %8 = vector.load %arg2[%c0_3, %c0_4] : memref<16x32xf32, #tpu.memory_space<vmem>>, vector<16x32xf32>
    %9 = arith.addf %7, %8 : vector<16x32xf32>
    %c0_5 = arith.constant 0 : index
    %c0_6 = arith.constant 0 : index
    %10 = vector.load %arg3[%c0_5, %c0_6] : memref<16x16xf32, #tpu.memory_space<vmem>>, vector<16x16xf32>
    %11 = tpu.iota {dimensions = array<i32: 1>} : vector<1x32xi32>
    %c0_7 = arith.constant 0 : index
    %c0_8 = arith.constant 0 : index
    %c0_9 = arith.constant 0 : index
    %12 = vector.load %arg5[%c0_7, %c0_8, %c0_9] : memref<2x1x32xf32, #tpu.memory_space<vmem>>, vector<1x1x32xf32>
    %13 = vector.shape_cast %12 : vector<1x1x32xf32> to vector<1x32xf32>
    %c0_10 = arith.constant 0 : index
    %c0_11 = arith.constant 0 : index
    %c0_12 = arith.constant 0 : index
    %14 = vector.load %arg6[%c0_10, %c0_11, %c0_12] : memref<2x1x32xf32, #tpu.memory_space<vmem>>, vector<1x1x32xf32>
    %15 = vector.shape_cast %14 : vector<1x1x32xf32> to vector<1x32xf32>
    %cst_13 = arith.constant dense<0.000000e+00> : vector<16xf32>
    %16 = vector.multi_reduction <add>, %9, %cst_13 [1] : vector<16x32xf32> to vector<16xf32>
    %17 = vector.shape_cast %16 : vector<16xf32> to vector<16x1xf32>
    %cst_14 = arith.constant 3.200000e+01 : f32
    %18 = vector.broadcast %cst_14 : f32 to vector<16x1xf32>
    %19 = arith.divf %17, %18 : vector<16x1xf32>
    %20 = vector.broadcast %19 : vector<16x1xf32> to vector<16x32xf32>
    %21 = arith.subf %9, %20 : vector<16x32xf32>
    %22 = arith.mulf %21, %21 : vector<16x32xf32>
    %cst_15 = arith.constant dense<0.000000e+00> : vector<16xf32>
    %23 = vector.multi_reduction <add>, %22, %cst_15 [1] : vector<16x32xf32> to vector<16xf32>
    %24 = vector.shape_cast %23 : vector<16xf32> to vector<16x1xf32>
    %cst_16 = arith.constant 3.200000e+01 : f32
    %25 = vector.broadcast %cst_16 : f32 to vector<16x1xf32>
    %26 = arith.divf %24, %25 : vector<16x1xf32>
    %27 = vector.broadcast %19 : vector<16x1xf32> to vector<16x32xf32>
    %28 = arith.subf %9, %27 : vector<16x32xf32>
    %cst_17 = arith.constant 9.99999974E-6 : f32
    %29 = vector.broadcast %cst_17 : f32 to vector<16x1xf32>
    %30 = arith.addf %26, %29 : vector<16x1xf32>
    %31 = math.rsqrt %30 : vector<16x1xf32>
    %32 = vector.broadcast %31 : vector<16x1xf32> to vector<16x32xf32>
    %33 = arith.mulf %28, %32 : vector<16x32xf32>
    %34 = vector.broadcast %13 : vector<1x32xf32> to vector<16x32xf32>
    %35 = arith.mulf %33, %34 : vector<16x32xf32>
    %36 = vector.broadcast %15 : vector<1x32xf32> to vector<16x32xf32>
    %37 = arith.addf %35, %36 : vector<16x32xf32>
    %c0_18 = arith.constant 0 : index
    %c0_19 = arith.constant 0 : index
    %c0_20 = arith.constant 0 : index
    %38 = vector.load %arg7[%c0_18, %c0_19, %c0_20] : memref<2x32x32xf32, #tpu.memory_space<vmem>>, vector<1x32x32xf32>
    %39 = vector.shape_cast %38 : vector<1x32x32xf32> to vector<32x32xf32>
    %cst_21 = arith.constant dense<0.000000e+00> : vector<16x32xf32>
    %40 = tpu.matmul %37, %39, %cst_21 {dimension_numbers = #tpu.dot_dimension_numbers<[1], [0], [0], [1], [0, 0, 1, 1], [], []>} : vector<16x32xf32>, vector<32x32xf32>, vector<16x32xf32> -> vector<16x32xf32>
    %c0_22 = arith.constant 0 : index
    %c0_23 = arith.constant 0 : index
    %c0_24 = arith.constant 0 : index
    %41 = vector.load %arg8[%c0_22, %c0_23, %c0_24] : memref<2x1x32xf32, #tpu.memory_space<vmem>>, vector<1x1x32xf32>
    %42 = vector.shape_cast %41 : vector<1x1x32xf32> to vector<1x32xf32>
    %43 = vector.broadcast %42 : vector<1x32xf32> to vector<16x32xf32>
    %44 = arith.addf %40, %43 : vector<16x32xf32>
    %c0_25 = arith.constant 0 : index
    %c0_26 = arith.constant 0 : index
    %c0_27 = arith.constant 0 : index
    %45 = vector.load %arg9[%c0_25, %c0_26, %c0_27] : memref<2x32x32xf32, #tpu.memory_space<vmem>>, vector<1x32x32xf32>
    %46 = vector.shape_cast %45 : vector<1x32x32xf32> to vector<32x32xf32>
    %cst_28 = arith.constant dense<0.000000e+00> : vector<16x32xf32>
    %47 = tpu.matmul %37, %46, %cst_28 {dimension_numbers = #tpu.dot_dimension_numbers<[1], [0], [0], [1], [0, 0, 1, 1], [], []>} : vector<16x32xf32>, vector<32x32xf32>, vector<16x32xf32> -> vector<16x32xf32>
    %c0_29 = arith.constant 0 : index
    %c0_30 = arith.constant 0 : index
    %c0_31 = arith.constant 0 : index
    %48 = vector.load %arg10[%c0_29, %c0_30, %c0_31] : memref<2x1x32xf32, #tpu.memory_space<vmem>>, vector<1x1x32xf32>
    %49 = vector.shape_cast %48 : vector<1x1x32xf32> to vector<1x32xf32>
    %50 = vector.broadcast %49 : vector<1x32xf32> to vector<16x32xf32>
    %51 = arith.addf %47, %50 : vector<16x32xf32>
    %c0_32 = arith.constant 0 : index
    %c0_33 = arith.constant 0 : index
    %c0_34 = arith.constant 0 : index
    %52 = vector.load %arg11[%c0_32, %c0_33, %c0_34] : memref<2x32x32xf32, #tpu.memory_space<vmem>>, vector<1x32x32xf32>
    %53 = vector.shape_cast %52 : vector<1x32x32xf32> to vector<32x32xf32>
    %cst_35 = arith.constant dense<0.000000e+00> : vector<16x32xf32>
    %54 = tpu.matmul %37, %53, %cst_35 {dimension_numbers = #tpu.dot_dimension_numbers<[1], [0], [0], [1], [0, 0, 1, 1], [], []>} : vector<16x32xf32>, vector<32x32xf32>, vector<16x32xf32> -> vector<16x32xf32>
    %c0_36 = arith.constant 0 : index
    %c0_37 = arith.constant 0 : index
    %c0_38 = arith.constant 0 : index
    %55 = vector.load %arg12[%c0_36, %c0_37, %c0_38] : memref<2x1x32xf32, #tpu.memory_space<vmem>>, vector<1x1x32xf32>
    %56 = vector.shape_cast %55 : vector<1x1x32xf32> to vector<1x32xf32>
    %57 = vector.broadcast %56 : vector<1x32xf32> to vector<16x32xf32>
    %58 = arith.addf %54, %57 : vector<16x32xf32>
    %cst_39 = arith.constant 0.000000e+00 : f32
    %59 = vector.broadcast %cst_39 : f32 to vector<16x32xf32>
    %c0_i32 = arith.constant 0 : i32
    %60 = vector.broadcast %c0_i32 : i32 to vector<1x32xi32>
    %61 = arith.cmpi sge, %11, %60 : vector<1x32xi32>
    %c8_i32 = arith.constant 8 : i32
    %62 = vector.broadcast %c8_i32 : i32 to vector<1x32xi32>
    %63 = arith.cmpi slt, %11, %62 : vector<1x32xi32>
    %64 = arith.andi %61, %63 : vector<1x32xi1>
    %cst_40 = arith.constant 0.000000e+00 : f32
    %65 = vector.shape_cast %64 : vector<1x32xi1> to vector<1x32xi1>
    %66 = vector.broadcast %65 : vector<1x32xi1> to vector<16x32xi1>
    %67 = vector.broadcast %cst_40 : f32 to vector<16x32xf32>
    %68 = arith.select %66, %44, %67 : vector<16x32xi1>, vector<16x32xf32>
    %cst_41 = arith.constant 0.000000e+00 : f32
    %69 = vector.shape_cast %64 : vector<1x32xi1> to vector<1x32xi1>
    %70 = vector.broadcast %69 : vector<1x32xi1> to vector<16x32xi1>
    %71 = vector.broadcast %cst_41 : f32 to vector<16x32xf32>
    %72 = arith.select %70, %58, %71 : vector<16x32xi1>, vector<16x32xf32>
    %cst_42 = arith.constant dense<0.000000e+00> : vector<16x16xf32>
    %73 = tpu.matmul %68, %51, %cst_42 {dimension_numbers = #tpu.dot_dimension_numbers<[1], [1], [0], [0], [0, 0, 1, 0], [], []>} : vector<16x32xf32>, vector<16x32xf32>, vector<16x16xf32> -> vector<16x16xf32>
    %74 = arith.addf %73, %10 : vector<16x16xf32>
    %cst_43 = arith.constant dense<0xFF800000> : vector<16xf32>
    %75 = vector.multi_reduction <maximumf>, %74, %cst_43 [1] : vector<16x16xf32> to vector<16xf32>
    %76 = vector.shape_cast %75 : vector<16xf32> to vector<16x1xf32>
    %77 = vector.broadcast %76 : vector<16x1xf32> to vector<16x16xf32>
    %78 = arith.subf %74, %77 : vector<16x16xf32>
    %79 = math.exp %78 : vector<16x16xf32>
    %cst_44 = arith.constant dense<0.000000e+00> : vector<16xf32>
    %80 = vector.multi_reduction <add>, %79, %cst_44 [1] : vector<16x16xf32> to vector<16xf32>
    %81 = vector.shape_cast %80 : vector<16xf32> to vector<16x1xf32>
    %82 = tpu.reciprocal %81 {approx = true} : vector<16x1xf32> -> vector<16x1xf32>
    %83 = vector.broadcast %82 : vector<16x1xf32> to vector<16x16xf32>
    %84 = arith.mulf %79, %83 : vector<16x16xf32>
    %cst_45 = arith.constant dense<0.000000e+00> : vector<16x32xf32>
    %85 = tpu.matmul %84, %72, %cst_45 {dimension_numbers = #tpu.dot_dimension_numbers<[1], [0], [0], [1], [0, 0, 1, 1], [], []>} : vector<16x16xf32>, vector<16x32xf32>, vector<16x32xf32> -> vector<16x32xf32>
    %86 = arith.addf %59, %85 : vector<16x32xf32>
    %c8_i32_46 = arith.constant 8 : i32
    %87 = vector.broadcast %c8_i32_46 : i32 to vector<1x32xi32>
    %88 = arith.cmpi sge, %11, %87 : vector<1x32xi32>
    %c16_i32 = arith.constant 16 : i32
    %89 = vector.broadcast %c16_i32 : i32 to vector<1x32xi32>
    %90 = arith.cmpi slt, %11, %89 : vector<1x32xi32>
    %91 = arith.andi %88, %90 : vector<1x32xi1>
    %cst_47 = arith.constant 0.000000e+00 : f32
    %92 = vector.shape_cast %91 : vector<1x32xi1> to vector<1x32xi1>
    %93 = vector.broadcast %92 : vector<1x32xi1> to vector<16x32xi1>
    %94 = vector.broadcast %cst_47 : f32 to vector<16x32xf32>
    %95 = arith.select %93, %44, %94 : vector<16x32xi1>, vector<16x32xf32>
    %cst_48 = arith.constant 0.000000e+00 : f32
    %96 = vector.shape_cast %91 : vector<1x32xi1> to vector<1x32xi1>
    %97 = vector.broadcast %96 : vector<1x32xi1> to vector<16x32xi1>
    %98 = vector.broadcast %cst_48 : f32 to vector<16x32xf32>
    %99 = arith.select %97, %58, %98 : vector<16x32xi1>, vector<16x32xf32>
    %cst_49 = arith.constant dense<0.000000e+00> : vector<16x16xf32>
    %100 = tpu.matmul %95, %51, %cst_49 {dimension_numbers = #tpu.dot_dimension_numbers<[1], [1], [0], [0], [0, 0, 1, 0], [], []>} : vector<16x32xf32>, vector<16x32xf32>, vector<16x16xf32> -> vector<16x16xf32>
    %101 = arith.addf %100, %10 : vector<16x16xf32>
    %cst_50 = arith.constant dense<0xFF800000> : vector<16xf32>
    %102 = vector.multi_reduction <maximumf>, %101, %cst_50 [1] : vector<16x16xf32> to vector<16xf32>
    %103 = vector.shape_cast %102 : vector<16xf32> to vector<16x1xf32>
    %104 = vector.broadcast %103 : vector<16x1xf32> to vector<16x16xf32>
    %105 = arith.subf %101, %104 : vector<16x16xf32>
    %106 = math.exp %105 : vector<16x16xf32>
    %cst_51 = arith.constant dense<0.000000e+00> : vector<16xf32>
    %107 = vector.multi_reduction <add>, %106, %cst_51 [1] : vector<16x16xf32> to vector<16xf32>
    %108 = vector.shape_cast %107 : vector<16xf32> to vector<16x1xf32>
    %109 = tpu.reciprocal %108 {approx = true} : vector<16x1xf32> -> vector<16x1xf32>
    %110 = vector.broadcast %109 : vector<16x1xf32> to vector<16x16xf32>
    %111 = arith.mulf %106, %110 : vector<16x16xf32>
    %cst_52 = arith.constant dense<0.000000e+00> : vector<16x32xf32>
    %112 = tpu.matmul %111, %99, %cst_52 {dimension_numbers = #tpu.dot_dimension_numbers<[1], [0], [0], [1], [0, 0, 1, 1], [], []>} : vector<16x16xf32>, vector<16x32xf32>, vector<16x32xf32> -> vector<16x32xf32>
    %113 = arith.addf %86, %112 : vector<16x32xf32>
    %c16_i32_53 = arith.constant 16 : i32
    %114 = vector.broadcast %c16_i32_53 : i32 to vector<1x32xi32>
    %115 = arith.cmpi sge, %11, %114 : vector<1x32xi32>
    %c24_i32 = arith.constant 24 : i32
    %116 = vector.broadcast %c24_i32 : i32 to vector<1x32xi32>
    %117 = arith.cmpi slt, %11, %116 : vector<1x32xi32>
    %118 = arith.andi %115, %117 : vector<1x32xi1>
    %cst_54 = arith.constant 0.000000e+00 : f32
    %119 = vector.shape_cast %118 : vector<1x32xi1> to vector<1x32xi1>
    %120 = vector.broadcast %119 : vector<1x32xi1> to vector<16x32xi1>
    %121 = vector.broadcast %cst_54 : f32 to vector<16x32xf32>
    %122 = arith.select %120, %44, %121 : vector<16x32xi1>, vector<16x32xf32>
    %cst_55 = arith.constant 0.000000e+00 : f32
    %123 = vector.shape_cast %118 : vector<1x32xi1> to vector<1x32xi1>
    %124 = vector.broadcast %123 : vector<1x32xi1> to vector<16x32xi1>
    %125 = vector.broadcast %cst_55 : f32 to vector<16x32xf32>
    %126 = arith.select %124, %58, %125 : vector<16x32xi1>, vector<16x32xf32>
    %cst_56 = arith.constant dense<0.000000e+00> : vector<16x16xf32>
    %127 = tpu.matmul %122, %51, %cst_56 {dimension_numbers = #tpu.dot_dimension_numbers<[1], [1], [0], [0], [0, 0, 1, 0], [], []>} : vector<16x32xf32>, vector<16x32xf32>, vector<16x16xf32> -> vector<16x16xf32>
    %128 = arith.addf %127, %10 : vector<16x16xf32>
    %cst_57 = arith.constant dense<0xFF800000> : vector<16xf32>
    %129 = vector.multi_reduction <maximumf>, %128, %cst_57 [1] : vector<16x16xf32> to vector<16xf32>
    %130 = vector.shape_cast %129 : vector<16xf32> to vector<16x1xf32>
    %131 = vector.broadcast %130 : vector<16x1xf32> to vector<16x16xf32>
    %132 = arith.subf %128, %131 : vector<16x16xf32>
    %133 = math.exp %132 : vector<16x16xf32>
    %cst_58 = arith.constant dense<0.000000e+00> : vector<16xf32>
    %134 = vector.multi_reduction <add>, %133, %cst_58 [1] : vector<16x16xf32> to vector<16xf32>
    %135 = vector.shape_cast %134 : vector<16xf32> to vector<16x1xf32>
    %136 = tpu.reciprocal %135 {approx = true} : vector<16x1xf32> -> vector<16x1xf32>
    %137 = vector.broadcast %136 : vector<16x1xf32> to vector<16x16xf32>
    %138 = arith.mulf %133, %137 : vector<16x16xf32>
    %cst_59 = arith.constant dense<0.000000e+00> : vector<16x32xf32>
    %139 = tpu.matmul %138, %126, %cst_59 {dimension_numbers = #tpu.dot_dimension_numbers<[1], [0], [0], [1], [0, 0, 1, 1], [], []>} : vector<16x16xf32>, vector<16x32xf32>, vector<16x32xf32> -> vector<16x32xf32>
    %140 = arith.addf %113, %139 : vector<16x32xf32>
    %c24_i32_60 = arith.constant 24 : i32
    %141 = vector.broadcast %c24_i32_60 : i32 to vector<1x32xi32>
    %142 = arith.cmpi sge, %11, %141 : vector<1x32xi32>
    %c32_i32 = arith.constant 32 : i32
    %143 = vector.broadcast %c32_i32 : i32 to vector<1x32xi32>
    %144 = arith.cmpi slt, %11, %143 : vector<1x32xi32>
    %145 = arith.andi %142, %144 : vector<1x32xi1>
    %cst_61 = arith.constant 0.000000e+00 : f32
    %146 = vector.shape_cast %145 : vector<1x32xi1> to vector<1x32xi1>
    %147 = vector.broadcast %146 : vector<1x32xi1> to vector<16x32xi1>
    %148 = vector.broadcast %cst_61 : f32 to vector<16x32xf32>
    %149 = arith.select %147, %44, %148 : vector<16x32xi1>, vector<16x32xf32>
    %cst_62 = arith.constant 0.000000e+00 : f32
    %150 = vector.shape_cast %145 : vector<1x32xi1> to vector<1x32xi1>
    %151 = vector.broadcast %150 : vector<1x32xi1> to vector<16x32xi1>
    %152 = vector.broadcast %cst_62 : f32 to vector<16x32xf32>
    %153 = arith.select %151, %58, %152 : vector<16x32xi1>, vector<16x32xf32>
    %cst_63 = arith.constant dense<0.000000e+00> : vector<16x16xf32>
    %154 = tpu.matmul %149, %51, %cst_63 {dimension_numbers = #tpu.dot_dimension_numbers<[1], [1], [0], [0], [0, 0, 1, 0], [], []>} : vector<16x32xf32>, vector<16x32xf32>, vector<16x16xf32> -> vector<16x16xf32>
    %155 = arith.addf %154, %10 : vector<16x16xf32>
    %cst_64 = arith.constant dense<0xFF800000> : vector<16xf32>
    %156 = vector.multi_reduction <maximumf>, %155, %cst_64 [1] : vector<16x16xf32> to vector<16xf32>
    %157 = vector.shape_cast %156 : vector<16xf32> to vector<16x1xf32>
    %158 = vector.broadcast %157 : vector<16x1xf32> to vector<16x16xf32>
    %159 = arith.subf %155, %158 : vector<16x16xf32>
    %160 = math.exp %159 : vector<16x16xf32>
    %cst_65 = arith.constant dense<0.000000e+00> : vector<16xf32>
    %161 = vector.multi_reduction <add>, %160, %cst_65 [1] : vector<16x16xf32> to vector<16xf32>
    %162 = vector.shape_cast %161 : vector<16xf32> to vector<16x1xf32>
    %163 = tpu.reciprocal %162 {approx = true} : vector<16x1xf32> -> vector<16x1xf32>
    %164 = vector.broadcast %163 : vector<16x1xf32> to vector<16x16xf32>
    %165 = arith.mulf %160, %164 : vector<16x16xf32>
    %cst_66 = arith.constant dense<0.000000e+00> : vector<16x32xf32>
    %166 = tpu.matmul %165, %153, %cst_66 {dimension_numbers = #tpu.dot_dimension_numbers<[1], [0], [0], [1], [0, 0, 1, 1], [], []>} : vector<16x16xf32>, vector<16x32xf32>, vector<16x32xf32> -> vector<16x32xf32>
    %167 = arith.addf %140, %166 : vector<16x32xf32>
    %c0_67 = arith.constant 0 : index
    %c0_68 = arith.constant 0 : index
    %c0_69 = arith.constant 0 : index
    %168 = vector.load %arg13[%c0_67, %c0_68, %c0_69] : memref<2x32x32xf32, #tpu.memory_space<vmem>>, vector<1x32x32xf32>
    %169 = vector.shape_cast %168 : vector<1x32x32xf32> to vector<32x32xf32>
    %cst_70 = arith.constant dense<0.000000e+00> : vector<16x32xf32>
    %170 = tpu.matmul %167, %169, %cst_70 {dimension_numbers = #tpu.dot_dimension_numbers<[1], [0], [0], [1], [0, 0, 1, 1], [], []>} : vector<16x32xf32>, vector<32x32xf32>, vector<16x32xf32> -> vector<16x32xf32>
    %c0_71 = arith.constant 0 : index
    %c0_72 = arith.constant 0 : index
    %c0_73 = arith.constant 0 : index
    %171 = vector.load %arg14[%c0_71, %c0_72, %c0_73] : memref<2x1x32xf32, #tpu.memory_space<vmem>>, vector<1x1x32xf32>
    %172 = vector.shape_cast %171 : vector<1x1x32xf32> to vector<1x32xf32>
    %173 = vector.broadcast %172 : vector<1x32xf32> to vector<16x32xf32>
    %174 = arith.addf %170, %173 : vector<16x32xf32>
    %175 = arith.addf %9, %174 : vector<16x32xf32>
    %c0_74 = arith.constant 0 : index
    %c0_75 = arith.constant 0 : index
    %c0_76 = arith.constant 0 : index
    %176 = vector.load %arg15[%c0_74, %c0_75, %c0_76] : memref<2x1x32xf32, #tpu.memory_space<vmem>>, vector<1x1x32xf32>
    %177 = vector.shape_cast %176 : vector<1x1x32xf32> to vector<1x32xf32>
    %c0_77 = arith.constant 0 : index
    %c0_78 = arith.constant 0 : index
    %c0_79 = arith.constant 0 : index
    %178 = vector.load %arg16[%c0_77, %c0_78, %c0_79] : memref<2x1x32xf32, #tpu.memory_space<vmem>>, vector<1x1x32xf32>
    %179 = vector.shape_cast %178 : vector<1x1x32xf32> to vector<1x32xf32>
    %cst_80 = arith.constant dense<0.000000e+00> : vector<16xf32>
    %180 = vector.multi_reduction <add>, %175, %cst_80 [1] : vector<16x32xf32> to vector<16xf32>
    %181 = vector.shape_cast %180 : vector<16xf32> to vector<16x1xf32>
    %cst_81 = arith.constant 3.200000e+01 : f32
    %182 = vector.broadcast %cst_81 : f32 to vector<16x1xf32>
    %183 = arith.divf %181, %182 : vector<16x1xf32>
    %184 = vector.broadcast %183 : vector<16x1xf32> to vector<16x32xf32>
    %185 = arith.subf %175, %184 : vector<16x32xf32>
    %186 = arith.mulf %185, %185 : vector<16x32xf32>
    %cst_82 = arith.constant dense<0.000000e+00> : vector<16xf32>
    %187 = vector.multi_reduction <add>, %186, %cst_82 [1] : vector<16x32xf32> to vector<16xf32>
    %188 = vector.shape_cast %187 : vector<16xf32> to vector<16x1xf32>
    %cst_83 = arith.constant 3.200000e+01 : f32
    %189 = vector.broadcast %cst_83 : f32 to vector<16x1xf32>
    %190 = arith.divf %188, %189 : vector<16x1xf32>
    %191 = vector.broadcast %183 : vector<16x1xf32> to vector<16x32xf32>
    %192 = arith.subf %175, %191 : vector<16x32xf32>
    %cst_84 = arith.constant 9.99999974E-6 : f32
    %193 = vector.broadcast %cst_84 : f32 to vector<16x1xf32>
    %194 = arith.addf %190, %193 : vector<16x1xf32>
    %195 = math.rsqrt %194 : vector<16x1xf32>
    %196 = vector.broadcast %195 : vector<16x1xf32> to vector<16x32xf32>
    %197 = arith.mulf %192, %196 : vector<16x32xf32>
    %198 = vector.broadcast %177 : vector<1x32xf32> to vector<16x32xf32>
    %199 = arith.mulf %197, %198 : vector<16x32xf32>
    %200 = vector.broadcast %179 : vector<1x32xf32> to vector<16x32xf32>
    %201 = arith.addf %199, %200 : vector<16x32xf32>
    %c0_85 = arith.constant 0 : index
    %c0_86 = arith.constant 0 : index
    %c0_87 = arith.constant 0 : index
    %202 = vector.load %arg17[%c0_85, %c0_86, %c0_87] : memref<2x32x128xf32, #tpu.memory_space<vmem>>, vector<1x32x128xf32>
    %203 = vector.shape_cast %202 : vector<1x32x128xf32> to vector<32x128xf32>
    %cst_88 = arith.constant dense<0.000000e+00> : vector<16x128xf32>
    %204 = tpu.matmul %201, %203, %cst_88 {dimension_numbers = #tpu.dot_dimension_numbers<[1], [0], [0], [1], [0, 0, 1, 1], [], []>} : vector<16x32xf32>, vector<32x128xf32>, vector<16x128xf32> -> vector<16x128xf32>
    %c0_89 = arith.constant 0 : index
    %c0_90 = arith.constant 0 : index
    %c0_91 = arith.constant 0 : index
    %205 = vector.load %arg18[%c0_89, %c0_90, %c0_91] : memref<2x1x128xf32, #tpu.memory_space<vmem>>, vector<1x1x128xf32>
    %206 = vector.shape_cast %205 : vector<1x1x128xf32> to vector<1x128xf32>
    %207 = vector.broadcast %206 : vector<1x128xf32> to vector<16x128xf32>
    %208 = arith.addf %204, %207 : vector<16x128xf32>
    %cst_92 = arith.constant 0.000000e+00 : f32
    %209 = vector.broadcast %cst_92 : f32 to vector<16x128xf32>
    %210 = arith.maximumf %208, %209 : vector<16x128xf32>
    %c0_93 = arith.constant 0 : index
    %c0_94 = arith.constant 0 : index
    %c0_95 = arith.constant 0 : index
    %211 = vector.load %arg19[%c0_93, %c0_94, %c0_95] : memref<2x128x32xf32, #tpu.memory_space<vmem>>, vector<1x128x32xf32>
    %212 = vector.shape_cast %211 : vector<1x128x32xf32> to vector<128x32xf32>
    %cst_96 = arith.constant dense<0.000000e+00> : vector<16x32xf32>
    %213 = tpu.matmul %210, %212, %cst_96 {dimension_numbers = #tpu.dot_dimension_numbers<[1], [0], [0], [1], [0, 0, 1, 1], [], []>} : vector<16x128xf32>, vector<128x32xf32>, vector<16x32xf32> -> vector<16x32xf32>
    %c0_97 = arith.constant 0 : index
    %c0_98 = arith.constant 0 : index
    %c0_99 = arith.constant 0 : index
    %214 = vector.load %arg20[%c0_97, %c0_98, %c0_99] : memref<2x1x32xf32, #tpu.memory_space<vmem>>, vector<1x1x32xf32>
    %215 = vector.shape_cast %214 : vector<1x1x32xf32> to vector<1x32xf32>
    %216 = vector.broadcast %215 : vector<1x32xf32> to vector<16x32xf32>
    %217 = arith.addf %213, %216 : vector<16x32xf32>
    %218 = arith.addf %175, %217 : vector<16x32xf32>
    %c1 = arith.constant 1 : index
    %c0_100 = arith.constant 0 : index
    %c0_101 = arith.constant 0 : index
    %219 = vector.load %arg5[%c1, %c0_100, %c0_101] : memref<2x1x32xf32, #tpu.memory_space<vmem>>, vector<1x1x32xf32>
    %220 = vector.shape_cast %219 : vector<1x1x32xf32> to vector<1x32xf32>
    %c1_102 = arith.constant 1 : index
    %c0_103 = arith.constant 0 : index
    %c0_104 = arith.constant 0 : index
    %221 = vector.load %arg6[%c1_102, %c0_103, %c0_104] : memref<2x1x32xf32, #tpu.memory_space<vmem>>, vector<1x1x32xf32>
    %222 = vector.shape_cast %221 : vector<1x1x32xf32> to vector<1x32xf32>
    %cst_105 = arith.constant dense<0.000000e+00> : vector<16xf32>
    %223 = vector.multi_reduction <add>, %218, %cst_105 [1] : vector<16x32xf32> to vector<16xf32>
    %224 = vector.shape_cast %223 : vector<16xf32> to vector<16x1xf32>
    %cst_106 = arith.constant 3.200000e+01 : f32
    %225 = vector.broadcast %cst_106 : f32 to vector<16x1xf32>
    %226 = arith.divf %224, %225 : vector<16x1xf32>
    %227 = vector.broadcast %226 : vector<16x1xf32> to vector<16x32xf32>
    %228 = arith.subf %218, %227 : vector<16x32xf32>
    %229 = arith.mulf %228, %228 : vector<16x32xf32>
    %cst_107 = arith.constant dense<0.000000e+00> : vector<16xf32>
    %230 = vector.multi_reduction <add>, %229, %cst_107 [1] : vector<16x32xf32> to vector<16xf32>
    %231 = vector.shape_cast %230 : vector<16xf32> to vector<16x1xf32>
    %cst_108 = arith.constant 3.200000e+01 : f32
    %232 = vector.broadcast %cst_108 : f32 to vector<16x1xf32>
    %233 = arith.divf %231, %232 : vector<16x1xf32>
    %234 = vector.broadcast %226 : vector<16x1xf32> to vector<16x32xf32>
    %235 = arith.subf %218, %234 : vector<16x32xf32>
    %cst_109 = arith.constant 9.99999974E-6 : f32
    %236 = vector.broadcast %cst_109 : f32 to vector<16x1xf32>
    %237 = arith.addf %233, %236 : vector<16x1xf32>
    %238 = math.rsqrt %237 : vector<16x1xf32>
    %239 = vector.broadcast %238 : vector<16x1xf32> to vector<16x32xf32>
    %240 = arith.mulf %235, %239 : vector<16x32xf32>
    %241 = vector.broadcast %220 : vector<1x32xf32> to vector<16x32xf32>
    %242 = arith.mulf %240, %241 : vector<16x32xf32>
    %243 = vector.broadcast %222 : vector<1x32xf32> to vector<16x32xf32>
    %244 = arith.addf %242, %243 : vector<16x32xf32>
    %c1_110 = arith.constant 1 : index
    %c0_111 = arith.constant 0 : index
    %c0_112 = arith.constant 0 : index
    %245 = vector.load %arg7[%c1_110, %c0_111, %c0_112] : memref<2x32x32xf32, #tpu.memory_space<vmem>>, vector<1x32x32xf32>
    %246 = vector.shape_cast %245 : vector<1x32x32xf32> to vector<32x32xf32>
    %cst_113 = arith.constant dense<0.000000e+00> : vector<16x32xf32>
    %247 = tpu.matmul %244, %246, %cst_113 {dimension_numbers = #tpu.dot_dimension_numbers<[1], [0], [0], [1], [0, 0, 1, 1], [], []>} : vector<16x32xf32>, vector<32x32xf32>, vector<16x32xf32> -> vector<16x32xf32>
    %c1_114 = arith.constant 1 : index
    %c0_115 = arith.constant 0 : index
    %c0_116 = arith.constant 0 : index
    %248 = vector.load %arg8[%c1_114, %c0_115, %c0_116] : memref<2x1x32xf32, #tpu.memory_space<vmem>>, vector<1x1x32xf32>
    %249 = vector.shape_cast %248 : vector<1x1x32xf32> to vector<1x32xf32>
    %250 = vector.broadcast %249 : vector<1x32xf32> to vector<16x32xf32>
    %251 = arith.addf %247, %250 : vector<16x32xf32>
    %c1_117 = arith.constant 1 : index
    %c0_118 = arith.constant 0 : index
    %c0_119 = arith.constant 0 : index
    %252 = vector.load %arg9[%c1_117, %c0_118, %c0_119] : memref<2x32x32xf32, #tpu.memory_space<vmem>>, vector<1x32x32xf32>
    %253 = vector.shape_cast %252 : vector<1x32x32xf32> to vector<32x32xf32>
    %cst_120 = arith.constant dense<0.000000e+00> : vector<16x32xf32>
    %254 = tpu.matmul %244, %253, %cst_120 {dimension_numbers = #tpu.dot_dimension_numbers<[1], [0], [0], [1], [0, 0, 1, 1], [], []>} : vector<16x32xf32>, vector<32x32xf32>, vector<16x32xf32> -> vector<16x32xf32>
    %c1_121 = arith.constant 1 : index
    %c0_122 = arith.constant 0 : index
    %c0_123 = arith.constant 0 : index
    %255 = vector.load %arg10[%c1_121, %c0_122, %c0_123] : memref<2x1x32xf32, #tpu.memory_space<vmem>>, vector<1x1x32xf32>
    %256 = vector.shape_cast %255 : vector<1x1x32xf32> to vector<1x32xf32>
    %257 = vector.broadcast %256 : vector<1x32xf32> to vector<16x32xf32>
    %258 = arith.addf %254, %257 : vector<16x32xf32>
    %c1_124 = arith.constant 1 : index
    %c0_125 = arith.constant 0 : index
    %c0_126 = arith.constant 0 : index
    %259 = vector.load %arg11[%c1_124, %c0_125, %c0_126] : memref<2x32x32xf32, #tpu.memory_space<vmem>>, vector<1x32x32xf32>
    %260 = vector.shape_cast %259 : vector<1x32x32xf32> to vector<32x32xf32>
    %cst_127 = arith.constant dense<0.000000e+00> : vector<16x32xf32>
    %261 = tpu.matmul %244, %260, %cst_127 {dimension_numbers = #tpu.dot_dimension_numbers<[1], [0], [0], [1], [0, 0, 1, 1], [], []>} : vector<16x32xf32>, vector<32x32xf32>, vector<16x32xf32> -> vector<16x32xf32>
    %c1_128 = arith.constant 1 : index
    %c0_129 = arith.constant 0 : index
    %c0_130 = arith.constant 0 : index
    %262 = vector.load %arg12[%c1_128, %c0_129, %c0_130] : memref<2x1x32xf32, #tpu.memory_space<vmem>>, vector<1x1x32xf32>
    %263 = vector.shape_cast %262 : vector<1x1x32xf32> to vector<1x32xf32>
    %264 = vector.broadcast %263 : vector<1x32xf32> to vector<16x32xf32>
    %265 = arith.addf %261, %264 : vector<16x32xf32>
    %cst_131 = arith.constant 0.000000e+00 : f32
    %266 = vector.broadcast %cst_131 : f32 to vector<16x32xf32>
    %c0_i32_132 = arith.constant 0 : i32
    %267 = vector.broadcast %c0_i32_132 : i32 to vector<1x32xi32>
    %268 = arith.cmpi sge, %11, %267 : vector<1x32xi32>
    %c8_i32_133 = arith.constant 8 : i32
    %269 = vector.broadcast %c8_i32_133 : i32 to vector<1x32xi32>
    %270 = arith.cmpi slt, %11, %269 : vector<1x32xi32>
    %271 = arith.andi %268, %270 : vector<1x32xi1>
    %cst_134 = arith.constant 0.000000e+00 : f32
    %272 = vector.shape_cast %271 : vector<1x32xi1> to vector<1x32xi1>
    %273 = vector.broadcast %272 : vector<1x32xi1> to vector<16x32xi1>
    %274 = vector.broadcast %cst_134 : f32 to vector<16x32xf32>
    %275 = arith.select %273, %251, %274 : vector<16x32xi1>, vector<16x32xf32>
    %cst_135 = arith.constant 0.000000e+00 : f32
    %276 = vector.shape_cast %271 : vector<1x32xi1> to vector<1x32xi1>
    %277 = vector.broadcast %276 : vector<1x32xi1> to vector<16x32xi1>
    %278 = vector.broadcast %cst_135 : f32 to vector<16x32xf32>
    %279 = arith.select %277, %265, %278 : vector<16x32xi1>, vector<16x32xf32>
    %cst_136 = arith.constant dense<0.000000e+00> : vector<16x16xf32>
    %280 = tpu.matmul %275, %258, %cst_136 {dimension_numbers = #tpu.dot_dimension_numbers<[1], [1], [0], [0], [0, 0, 1, 0], [], []>} : vector<16x32xf32>, vector<16x32xf32>, vector<16x16xf32> -> vector<16x16xf32>
    %281 = arith.addf %280, %10 : vector<16x16xf32>
    %cst_137 = arith.constant dense<0xFF800000> : vector<16xf32>
    %282 = vector.multi_reduction <maximumf>, %281, %cst_137 [1] : vector<16x16xf32> to vector<16xf32>
    %283 = vector.shape_cast %282 : vector<16xf32> to vector<16x1xf32>
    %284 = vector.broadcast %283 : vector<16x1xf32> to vector<16x16xf32>
    %285 = arith.subf %281, %284 : vector<16x16xf32>
    %286 = math.exp %285 : vector<16x16xf32>
    %cst_138 = arith.constant dense<0.000000e+00> : vector<16xf32>
    %287 = vector.multi_reduction <add>, %286, %cst_138 [1] : vector<16x16xf32> to vector<16xf32>
    %288 = vector.shape_cast %287 : vector<16xf32> to vector<16x1xf32>
    %289 = tpu.reciprocal %288 {approx = true} : vector<16x1xf32> -> vector<16x1xf32>
    %290 = vector.broadcast %289 : vector<16x1xf32> to vector<16x16xf32>
    %291 = arith.mulf %286, %290 : vector<16x16xf32>
    %cst_139 = arith.constant dense<0.000000e+00> : vector<16x32xf32>
    %292 = tpu.matmul %291, %279, %cst_139 {dimension_numbers = #tpu.dot_dimension_numbers<[1], [0], [0], [1], [0, 0, 1, 1], [], []>} : vector<16x16xf32>, vector<16x32xf32>, vector<16x32xf32> -> vector<16x32xf32>
    %293 = arith.addf %266, %292 : vector<16x32xf32>
    %c8_i32_140 = arith.constant 8 : i32
    %294 = vector.broadcast %c8_i32_140 : i32 to vector<1x32xi32>
    %295 = arith.cmpi sge, %11, %294 : vector<1x32xi32>
    %c16_i32_141 = arith.constant 16 : i32
    %296 = vector.broadcast %c16_i32_141 : i32 to vector<1x32xi32>
    %297 = arith.cmpi slt, %11, %296 : vector<1x32xi32>
    %298 = arith.andi %295, %297 : vector<1x32xi1>
    %cst_142 = arith.constant 0.000000e+00 : f32
    %299 = vector.shape_cast %298 : vector<1x32xi1> to vector<1x32xi1>
    %300 = vector.broadcast %299 : vector<1x32xi1> to vector<16x32xi1>
    %301 = vector.broadcast %cst_142 : f32 to vector<16x32xf32>
    %302 = arith.select %300, %251, %301 : vector<16x32xi1>, vector<16x32xf32>
    %cst_143 = arith.constant 0.000000e+00 : f32
    %303 = vector.shape_cast %298 : vector<1x32xi1> to vector<1x32xi1>
    %304 = vector.broadcast %303 : vector<1x32xi1> to vector<16x32xi1>
    %305 = vector.broadcast %cst_143 : f32 to vector<16x32xf32>
    %306 = arith.select %304, %265, %305 : vector<16x32xi1>, vector<16x32xf32>
    %cst_144 = arith.constant dense<0.000000e+00> : vector<16x16xf32>
    %307 = tpu.matmul %302, %258, %cst_144 {dimension_numbers = #tpu.dot_dimension_numbers<[1], [1], [0], [0], [0, 0, 1, 0], [], []>} : vector<16x32xf32>, vector<16x32xf32>, vector<16x16xf32> -> vector<16x16xf32>
    %308 = arith.addf %307, %10 : vector<16x16xf32>
    %cst_145 = arith.constant dense<0xFF800000> : vector<16xf32>
    %309 = vector.multi_reduction <maximumf>, %308, %cst_145 [1] : vector<16x16xf32> to vector<16xf32>
    %310 = vector.shape_cast %309 : vector<16xf32> to vector<16x1xf32>
    %311 = vector.broadcast %310 : vector<16x1xf32> to vector<16x16xf32>
    %312 = arith.subf %308, %311 : vector<16x16xf32>
    %313 = math.exp %312 : vector<16x16xf32>
    %cst_146 = arith.constant dense<0.000000e+00> : vector<16xf32>
    %314 = vector.multi_reduction <add>, %313, %cst_146 [1] : vector<16x16xf32> to vector<16xf32>
    %315 = vector.shape_cast %314 : vector<16xf32> to vector<16x1xf32>
    %316 = tpu.reciprocal %315 {approx = true} : vector<16x1xf32> -> vector<16x1xf32>
    %317 = vector.broadcast %316 : vector<16x1xf32> to vector<16x16xf32>
    %318 = arith.mulf %313, %317 : vector<16x16xf32>
    %cst_147 = arith.constant dense<0.000000e+00> : vector<16x32xf32>
    %319 = tpu.matmul %318, %306, %cst_147 {dimension_numbers = #tpu.dot_dimension_numbers<[1], [0], [0], [1], [0, 0, 1, 1], [], []>} : vector<16x16xf32>, vector<16x32xf32>, vector<16x32xf32> -> vector<16x32xf32>
    %320 = arith.addf %293, %319 : vector<16x32xf32>
    %c16_i32_148 = arith.constant 16 : i32
    %321 = vector.broadcast %c16_i32_148 : i32 to vector<1x32xi32>
    %322 = arith.cmpi sge, %11, %321 : vector<1x32xi32>
    %c24_i32_149 = arith.constant 24 : i32
    %323 = vector.broadcast %c24_i32_149 : i32 to vector<1x32xi32>
    %324 = arith.cmpi slt, %11, %323 : vector<1x32xi32>
    %325 = arith.andi %322, %324 : vector<1x32xi1>
    %cst_150 = arith.constant 0.000000e+00 : f32
    %326 = vector.shape_cast %325 : vector<1x32xi1> to vector<1x32xi1>
    %327 = vector.broadcast %326 : vector<1x32xi1> to vector<16x32xi1>
    %328 = vector.broadcast %cst_150 : f32 to vector<16x32xf32>
    %329 = arith.select %327, %251, %328 : vector<16x32xi1>, vector<16x32xf32>
    %cst_151 = arith.constant 0.000000e+00 : f32
    %330 = vector.shape_cast %325 : vector<1x32xi1> to vector<1x32xi1>
    %331 = vector.broadcast %330 : vector<1x32xi1> to vector<16x32xi1>
    %332 = vector.broadcast %cst_151 : f32 to vector<16x32xf32>
    %333 = arith.select %331, %265, %332 : vector<16x32xi1>, vector<16x32xf32>
    %cst_152 = arith.constant dense<0.000000e+00> : vector<16x16xf32>
    %334 = tpu.matmul %329, %258, %cst_152 {dimension_numbers = #tpu.dot_dimension_numbers<[1], [1], [0], [0], [0, 0, 1, 0], [], []>} : vector<16x32xf32>, vector<16x32xf32>, vector<16x16xf32> -> vector<16x16xf32>
    %335 = arith.addf %334, %10 : vector<16x16xf32>
    %cst_153 = arith.constant dense<0xFF800000> : vector<16xf32>
    %336 = vector.multi_reduction <maximumf>, %335, %cst_153 [1] : vector<16x16xf32> to vector<16xf32>
    %337 = vector.shape_cast %336 : vector<16xf32> to vector<16x1xf32>
    %338 = vector.broadcast %337 : vector<16x1xf32> to vector<16x16xf32>
    %339 = arith.subf %335, %338 : vector<16x16xf32>
    %340 = math.exp %339 : vector<16x16xf32>
    %cst_154 = arith.constant dense<0.000000e+00> : vector<16xf32>
    %341 = vector.multi_reduction <add>, %340, %cst_154 [1] : vector<16x16xf32> to vector<16xf32>
    %342 = vector.shape_cast %341 : vector<16xf32> to vector<16x1xf32>
    %343 = tpu.reciprocal %342 {approx = true} : vector<16x1xf32> -> vector<16x1xf32>
    %344 = vector.broadcast %343 : vector<16x1xf32> to vector<16x16xf32>
    %345 = arith.mulf %340, %344 : vector<16x16xf32>
    %cst_155 = arith.constant dense<0.000000e+00> : vector<16x32xf32>
    %346 = tpu.matmul %345, %333, %cst_155 {dimension_numbers = #tpu.dot_dimension_numbers<[1], [0], [0], [1], [0, 0, 1, 1], [], []>} : vector<16x16xf32>, vector<16x32xf32>, vector<16x32xf32> -> vector<16x32xf32>
    %347 = arith.addf %320, %346 : vector<16x32xf32>
    %c24_i32_156 = arith.constant 24 : i32
    %348 = vector.broadcast %c24_i32_156 : i32 to vector<1x32xi32>
    %349 = arith.cmpi sge, %11, %348 : vector<1x32xi32>
    %c32_i32_157 = arith.constant 32 : i32
    %350 = vector.broadcast %c32_i32_157 : i32 to vector<1x32xi32>
    %351 = arith.cmpi slt, %11, %350 : vector<1x32xi32>
    %352 = arith.andi %349, %351 : vector<1x32xi1>
    %cst_158 = arith.constant 0.000000e+00 : f32
    %353 = vector.shape_cast %352 : vector<1x32xi1> to vector<1x32xi1>
    %354 = vector.broadcast %353 : vector<1x32xi1> to vector<16x32xi1>
    %355 = vector.broadcast %cst_158 : f32 to vector<16x32xf32>
    %356 = arith.select %354, %251, %355 : vector<16x32xi1>, vector<16x32xf32>
    %cst_159 = arith.constant 0.000000e+00 : f32
    %357 = vector.shape_cast %352 : vector<1x32xi1> to vector<1x32xi1>
    %358 = vector.broadcast %357 : vector<1x32xi1> to vector<16x32xi1>
    %359 = vector.broadcast %cst_159 : f32 to vector<16x32xf32>
    %360 = arith.select %358, %265, %359 : vector<16x32xi1>, vector<16x32xf32>
    %cst_160 = arith.constant dense<0.000000e+00> : vector<16x16xf32>
    %361 = tpu.matmul %356, %258, %cst_160 {dimension_numbers = #tpu.dot_dimension_numbers<[1], [1], [0], [0], [0, 0, 1, 0], [], []>} : vector<16x32xf32>, vector<16x32xf32>, vector<16x16xf32> -> vector<16x16xf32>
    %362 = arith.addf %361, %10 : vector<16x16xf32>
    %cst_161 = arith.constant dense<0xFF800000> : vector<16xf32>
    %363 = vector.multi_reduction <maximumf>, %362, %cst_161 [1] : vector<16x16xf32> to vector<16xf32>
    %364 = vector.shape_cast %363 : vector<16xf32> to vector<16x1xf32>
    %365 = vector.broadcast %364 : vector<16x1xf32> to vector<16x16xf32>
    %366 = arith.subf %362, %365 : vector<16x16xf32>
    %367 = math.exp %366 : vector<16x16xf32>
    %cst_162 = arith.constant dense<0.000000e+00> : vector<16xf32>
    %368 = vector.multi_reduction <add>, %367, %cst_162 [1] : vector<16x16xf32> to vector<16xf32>
    %369 = vector.shape_cast %368 : vector<16xf32> to vector<16x1xf32>
    %370 = tpu.reciprocal %369 {approx = true} : vector<16x1xf32> -> vector<16x1xf32>
    %371 = vector.broadcast %370 : vector<16x1xf32> to vector<16x16xf32>
    %372 = arith.mulf %367, %371 : vector<16x16xf32>
    %cst_163 = arith.constant dense<0.000000e+00> : vector<16x32xf32>
    %373 = tpu.matmul %372, %360, %cst_163 {dimension_numbers = #tpu.dot_dimension_numbers<[1], [0], [0], [1], [0, 0, 1, 1], [], []>} : vector<16x16xf32>, vector<16x32xf32>, vector<16x32xf32> -> vector<16x32xf32>
    %374 = arith.addf %347, %373 : vector<16x32xf32>
    %c1_164 = arith.constant 1 : index
    %c0_165 = arith.constant 0 : index
    %c0_166 = arith.constant 0 : index
    %375 = vector.load %arg13[%c1_164, %c0_165, %c0_166] : memref<2x32x32xf32, #tpu.memory_space<vmem>>, vector<1x32x32xf32>
    %376 = vector.shape_cast %375 : vector<1x32x32xf32> to vector<32x32xf32>
    %cst_167 = arith.constant dense<0.000000e+00> : vector<16x32xf32>
    %377 = tpu.matmul %374, %376, %cst_167 {dimension_numbers = #tpu.dot_dimension_numbers<[1], [0], [0], [1], [0, 0, 1, 1], [], []>} : vector<16x32xf32>, vector<32x32xf32>, vector<16x32xf32> -> vector<16x32xf32>
    %c1_168 = arith.constant 1 : index
    %c0_169 = arith.constant 0 : index
    %c0_170 = arith.constant 0 : index
    %378 = vector.load %arg14[%c1_168, %c0_169, %c0_170] : memref<2x1x32xf32, #tpu.memory_space<vmem>>, vector<1x1x32xf32>
    %379 = vector.shape_cast %378 : vector<1x1x32xf32> to vector<1x32xf32>
    %380 = vector.broadcast %379 : vector<1x32xf32> to vector<16x32xf32>
    %381 = arith.addf %377, %380 : vector<16x32xf32>
    %382 = arith.addf %218, %381 : vector<16x32xf32>
    %c1_171 = arith.constant 1 : index
    %c0_172 = arith.constant 0 : index
    %c0_173 = arith.constant 0 : index
    %383 = vector.load %arg15[%c1_171, %c0_172, %c0_173] : memref<2x1x32xf32, #tpu.memory_space<vmem>>, vector<1x1x32xf32>
    %384 = vector.shape_cast %383 : vector<1x1x32xf32> to vector<1x32xf32>
    %c1_174 = arith.constant 1 : index
    %c0_175 = arith.constant 0 : index
    %c0_176 = arith.constant 0 : index
    %385 = vector.load %arg16[%c1_174, %c0_175, %c0_176] : memref<2x1x32xf32, #tpu.memory_space<vmem>>, vector<1x1x32xf32>
    %386 = vector.shape_cast %385 : vector<1x1x32xf32> to vector<1x32xf32>
    %cst_177 = arith.constant dense<0.000000e+00> : vector<16xf32>
    %387 = vector.multi_reduction <add>, %382, %cst_177 [1] : vector<16x32xf32> to vector<16xf32>
    %388 = vector.shape_cast %387 : vector<16xf32> to vector<16x1xf32>
    %cst_178 = arith.constant 3.200000e+01 : f32
    %389 = vector.broadcast %cst_178 : f32 to vector<16x1xf32>
    %390 = arith.divf %388, %389 : vector<16x1xf32>
    %391 = vector.broadcast %390 : vector<16x1xf32> to vector<16x32xf32>
    %392 = arith.subf %382, %391 : vector<16x32xf32>
    %393 = arith.mulf %392, %392 : vector<16x32xf32>
    %cst_179 = arith.constant dense<0.000000e+00> : vector<16xf32>
    %394 = vector.multi_reduction <add>, %393, %cst_179 [1] : vector<16x32xf32> to vector<16xf32>
    %395 = vector.shape_cast %394 : vector<16xf32> to vector<16x1xf32>
    %cst_180 = arith.constant 3.200000e+01 : f32
    %396 = vector.broadcast %cst_180 : f32 to vector<16x1xf32>
    %397 = arith.divf %395, %396 : vector<16x1xf32>
    %398 = vector.broadcast %390 : vector<16x1xf32> to vector<16x32xf32>
    %399 = arith.subf %382, %398 : vector<16x32xf32>
    %cst_181 = arith.constant 9.99999974E-6 : f32
    %400 = vector.broadcast %cst_181 : f32 to vector<16x1xf32>
    %401 = arith.addf %397, %400 : vector<16x1xf32>
    %402 = math.rsqrt %401 : vector<16x1xf32>
    %403 = vector.broadcast %402 : vector<16x1xf32> to vector<16x32xf32>
    %404 = arith.mulf %399, %403 : vector<16x32xf32>
    %405 = vector.broadcast %384 : vector<1x32xf32> to vector<16x32xf32>
    %406 = arith.mulf %404, %405 : vector<16x32xf32>
    %407 = vector.broadcast %386 : vector<1x32xf32> to vector<16x32xf32>
    %408 = arith.addf %406, %407 : vector<16x32xf32>
    %c1_182 = arith.constant 1 : index
    %c0_183 = arith.constant 0 : index
    %c0_184 = arith.constant 0 : index
    %409 = vector.load %arg17[%c1_182, %c0_183, %c0_184] : memref<2x32x128xf32, #tpu.memory_space<vmem>>, vector<1x32x128xf32>
    %410 = vector.shape_cast %409 : vector<1x32x128xf32> to vector<32x128xf32>
    %cst_185 = arith.constant dense<0.000000e+00> : vector<16x128xf32>
    %411 = tpu.matmul %408, %410, %cst_185 {dimension_numbers = #tpu.dot_dimension_numbers<[1], [0], [0], [1], [0, 0, 1, 1], [], []>} : vector<16x32xf32>, vector<32x128xf32>, vector<16x128xf32> -> vector<16x128xf32>
    %c1_186 = arith.constant 1 : index
    %c0_187 = arith.constant 0 : index
    %c0_188 = arith.constant 0 : index
    %412 = vector.load %arg18[%c1_186, %c0_187, %c0_188] : memref<2x1x128xf32, #tpu.memory_space<vmem>>, vector<1x1x128xf32>
    %413 = vector.shape_cast %412 : vector<1x1x128xf32> to vector<1x128xf32>
    %414 = vector.broadcast %413 : vector<1x128xf32> to vector<16x128xf32>
    %415 = arith.addf %411, %414 : vector<16x128xf32>
    %cst_189 = arith.constant 0.000000e+00 : f32
    %416 = vector.broadcast %cst_189 : f32 to vector<16x128xf32>
    %417 = arith.maximumf %415, %416 : vector<16x128xf32>
    %c1_190 = arith.constant 1 : index
    %c0_191 = arith.constant 0 : index
    %c0_192 = arith.constant 0 : index
    %418 = vector.load %arg19[%c1_190, %c0_191, %c0_192] : memref<2x128x32xf32, #tpu.memory_space<vmem>>, vector<1x128x32xf32>
    %419 = vector.shape_cast %418 : vector<1x128x32xf32> to vector<128x32xf32>
    %cst_193 = arith.constant dense<0.000000e+00> : vector<16x32xf32>
    %420 = tpu.matmul %417, %419, %cst_193 {dimension_numbers = #tpu.dot_dimension_numbers<[1], [0], [0], [1], [0, 0, 1, 1], [], []>} : vector<16x128xf32>, vector<128x32xf32>, vector<16x32xf32> -> vector<16x32xf32>
    %c1_194 = arith.constant 1 : index
    %c0_195 = arith.constant 0 : index
    %c0_196 = arith.constant 0 : index
    %421 = vector.load %arg20[%c1_194, %c0_195, %c0_196] : memref<2x1x32xf32, #tpu.memory_space<vmem>>, vector<1x1x32xf32>
    %422 = vector.shape_cast %421 : vector<1x1x32xf32> to vector<1x32xf32>
    %423 = vector.broadcast %422 : vector<1x32xf32> to vector<16x32xf32>
    %424 = arith.addf %420, %423 : vector<16x32xf32>
    %425 = arith.addf %382, %424 : vector<16x32xf32>
    %c0_197 = arith.constant 0 : index
    %c0_198 = arith.constant 0 : index
    %426 = vector.load %arg4[%c0_197, %c0_198] : memref<2x16xf32, #tpu.memory_space<vmem>>, vector<2x16xf32>
    %cst_199 = arith.constant dense<0.000000e+00> : vector<2x32xf32>
    %427 = tpu.matmul %426, %425, %cst_199 {dimension_numbers = #tpu.dot_dimension_numbers<[1], [0], [0], [1], [0, 0, 1, 1], [], []>} : vector<2x16xf32>, vector<16x32xf32>, vector<2x32xf32> -> vector<2x32xf32>
    %c0_200 = arith.constant 0 : index
    %c0_201 = arith.constant 0 : index
    %428 = vector.load %arg21[%c0_200, %c0_201] : memref<32x128xf32, #tpu.memory_space<vmem>>, vector<32x128xf32>
    %cst_202 = arith.constant dense<0.000000e+00> : vector<2x128xf32>
    %429 = tpu.matmul %427, %428, %cst_202 {dimension_numbers = #tpu.dot_dimension_numbers<[1], [0], [0], [1], [0, 0, 1, 1], [], []>} : vector<2x32xf32>, vector<32x128xf32>, vector<2x128xf32> -> vector<2x128xf32>
    %c0_203 = arith.constant 0 : index
    %c0_204 = arith.constant 0 : index
    %430 = vector.load %arg22[%c0_203, %c0_204] : memref<1x128xf32, #tpu.memory_space<vmem>>, vector<1x128xf32>
    %431 = vector.broadcast %430 : vector<1x128xf32> to vector<2x128xf32>
    %432 = arith.addf %429, %431 : vector<2x128xf32>
    %c0_205 = arith.constant 0 : index
    %c0_206 = arith.constant 0 : index
    %433 = vector.load %arg23[%c0_205, %c0_206] : memref<2x128xf32, #tpu.memory_space<vmem>>, vector<2x128xf32>
    tpu.vector_store %arg23[%c0_205, %c0_206], %432 {strides = array<i32>} : memref<2x128xf32, #tpu.memory_space<vmem>>, vector<2x128xf32>,
    return
  }
}

</mosaic_0001>

<bundles_post_ra>
// kernel: tpu_custom_call.1
= control target key start
LH: loop header
LB: loop body
LE: loop exit
PB: predicated region body
PF: predicated region fallthrough
CT: control target
= control target key end

     0   :  { %s5171_s0 = inlined_call_operand.vmem [shape: s32[16,1], index: 0, kind: input, shape index: {}]   ;;  %s5172_s1 = inlined_call_operand.vmem [shape: f32[128,32], index: 1, kind: input, shape index: {}]   ;;  %s5173_s2 = inlined_call_operand.vmem [shape: f32[16,32], index: 2, kind: input, shape index: {}]   ;;  %s5174_s3 = inlined_call_operand.vmem [shape: f32[16,16], index: 3, kind: input, shape index: {}]   ;;  %s5175_s4 = inlined_call_operand.vmem [shape: f32[2,16], index: 4, kind: input, shape index: {}]   ;;  %s5176_s5 = inlined_call_operand.vmem [shape: f32[2,1,32], index: 5, kind: input, shape index: {}]   ;;  %s5177_s6 = inlined_call_operand.vmem [shape: f32[2,1,32], index: 6, kind: input, shape index: {}]   ;;  %s5178_s7 = inlined_call_operand.vmem [shape: f32[2,32,32], index: 7, kind: input, shape index: {}]   ;;  %s5179_s8 = inlined_call_operand.vmem [shape: f32[2,1,32], index: 8, kind: input, shape index: {}]   ;;  %s5180_s9 = inlined_call_operand.vmem [shape: f32[2,32,32], index: 9, kind: input, shape index: {}]   ;;  %s5181_s10 = inlined_call_operand.vmem [shape: f32[2,1,32], index: 10, kind: input, shape index: {}]   ;;  %s5182_s11 = inlined_call_operand.vmem [shape: f32[2,32,32], index: 11, kind: input, shape index: {}]   ;;  %s5183_s12 = inlined_call_operand.vmem [shape: f32[2,1,32], index: 12, kind: input, shape index: {}]   ;;  %s5184_s13 = inlined_call_operand.vmem [shape: f32[2,32,32], index: 13, kind: input, shape index: {}]   ;;  %s5185_s14 = inlined_call_operand.vmem [shape: f32[2,1,32], index: 14, kind: input, shape index: {}]   ;;  %s5186_s15 = inlined_call_operand.vmem [shape: f32[2,1,32], index: 15, kind: input, shape index: {}]   ;;  %s5187_s16 = inlined_call_operand.vmem [shape: f32[2,1,32], index: 16, kind: input, shape index: {}]   ;;  %s5188_s17 = inlined_call_operand.vmem [shape: f32[2,32,128], index: 17, kind: input, shape index: {}]   ;;  %s5189_s18 = inlined_call_operand.vmem [shape: f32[2,1,128], index: 18, kind: input, shape index: {}]   ;;  %s5190_s19 = inlined_call_operand.vmem [shape: f32[2,128,32], index: 19, kind: input, shape index: {}]   ;;  %s5191_s20 = inlined_call_operand.vmem [shape: f32[2,1,32], index: 20, kind: input, shape index: {}]   ;;  %s5192_s21 = inlined_call_operand.vmem [shape: f32[32,128], index: 21, kind: input, shape index: {}]   ;;  %s5193_s22 = inlined_call_operand.vmem [shape: f32[1,128], index: 22, kind: input, shape index: {}]   ;;  %s5194_s23 = inlined_call_operand.hbm [shape: f32[2,128], index: 23, kind: output, shape index: {}]  }
   0x1   :  { %5203 = sst [smem:[#allocation5_spill]] %s5171_s0 }
   0x2   :  { %5204 = sst [smem:[#allocation6_spill]] %s5172_s1 }
   0x3   :  { %5205 = sst [smem:[#allocation7_spill]] %s5173_s2 }
   0x4   :  { %5206 = sst [smem:[#allocation8_spill]] %s5174_s3 }
   0x5   :  { %5207 = sst [smem:[#allocation9_spill]] %s5175_s4 }
   0x6   :  { %5208 = sst [smem:[#allocation10_spill]] %s5176_s5 }
   0x7   :  { %5209 = sst [smem:[#allocation11_spill]] %s5177_s6 }
   0x8   :  { %5210 = sst [smem:[#allocation12_spill]] %s5178_s7 }
   0x9   :  { %5211 = sst [smem:[#allocation13_spill]] %s5189_s18 }
   0xa   :  { %s5212_s24 = sld [smem:[#allocation5_spill]]  ;;  %s5213_s18 = sld [smem:[#allocation6_spill]]  ;;  %v4294_v2 = vmov 0  }
   0xb   :  { %4189 = vset.pattern.permute.xlu0 %v4294_v2 }
  0x10   :  { %v75_v0 = vld [vmem:[%s5212_s24] sm:$0xff]  ;;  %v92_v3 = vld [vmem:[%s5213_s18 + $0x8] sm:$0xff]  ;;  %v93_v4 = vld [vmem:[%s5213_s18 + $0x10] sm:$0xff] }
  0x11   :  { %v91_v1 = vld [vmem:[%s5213_s18] sm:$0xff]  ;;  %v94_v5 = vld [vmem:[%s5213_s18 + $0x18] sm:$0xff]  ;;  %80 = vperm.xlu0 %4189, %v75_v0   ;;  %v76_v8 = vld [vmem:[%s5212_s24 + $0x8] sm:$0xff] }
  0x12   :  { %v3890_v6 = vpack.c.bf16 %v92_v3, %v91_v1  ;;  %v3894_v7 = vpack.c.bf16 %v94_v5, %v93_v4  ;;  %v95_v9 = vld [vmem:[%s5213_s18 + $0x20] sm:$0xff]  ;;  %v96_v10 = vld [vmem:[%s5213_s18 + $0x28] sm:$0xff] }
  0x13   :  { %v3898_v11 = vpack.c.bf16 %v96_v10, %v95_v9 }
  0x14   :  { %3891 = vmatprep.subr.bf16.mxu0 %v3890_v6 }
  0x15   :  { %3893 = vmatpush3.bf16.msra.mxu0 %v3890_v6  ;;  %83 = vperm.xlu0 %4189, %v76_v8  }
  0x16   :  { %3895 = vmatprep.subr.bf16.mxu0 %v3894_v7 }
  0x17   :  { %28 = vsyncpa [#allocation3], 0  ;;  %v97_v12 = vld [vmem:[%s5213_s18 + $0x30] sm:$0xff]  ;;  %v98_v13 = vld [vmem:[%s5213_s18 + $0x38] sm:$0xff]  ;;  %v77_v27 = vlaneseq  ;;  %v4295_v30 = vmov 1.0   ;;  %s5214_s6 = sld [smem:[#allocation7_spill]] }
  0x18   :  { %v3902_v14 = vpack.c.bf16 %v98_v13, %v97_v12  ;;  %v99_v15 = vld [vmem:[%s5213_s18 + $0x40] sm:$0xff]  ;;  %v100_v16 = vld [vmem:[%s5213_s18 + $0x48] sm:$0xff]  ;;  %v101_v18 = vld [vmem:[%s5213_s18 + $0x50] sm:$0xff]  ;;  %vm188_vm2 = vcmask 261120   ;;  %s5215_s3 = sld [smem:[#allocation12_spill]]  ;;  %s5216_s7 = sld [smem:[#allocation10_spill]] }
  0x19   :  { %3897 = vmatpush3.bf16.msra.mxu0 %v3894_v7  ;;  %v3906_v17 = vpack.c.bf16 %v100_v16, %v99_v15  ;;  %v102_v19 = vld [vmem:[%s5213_s18 + $0x58] sm:$0xff]  ;;  %v103_v21 = vld [vmem:[%s5213_s18 + $0x60] sm:$0xff]  ;;  %v104_v22 = vld [vmem:[%s5213_s18 + $0x68] sm:$0xff]  ;;  %v4474_v28 = vand.u32 127, %v77_v27  ;;  %s5217_s0 = sld [smem:[#allocation11_spill]]  ;;  %s5228_s2 = sld [smem:[#allocation8_spill]] }
  0x1a   :  { %3899 = vmatprep.subr.bf16.mxu0 %v3898_v11  ;;  %v3910_v20 = vpack.c.bf16 %v102_v19, %v101_v18  ;;  %v3914_v23 = vpack.c.bf16 %v104_v22, %v103_v21  ;;  %v105_v24 = vld [vmem:[%s5213_s18 + $0x70] sm:$0xff]  ;;  %v106_v25 = vld [vmem:[%s5213_s18 + $0x78] sm:$0xff]  ;;  %v324_v56 = vld [vmem:[%s5180_s9] sm:$0xff]  ;;  %vm592_vm13 = vcmask 130048   ;;  %s5235_s30 = sld [smem:[#allocation13_spill]]  ;;  %s5236_s4 = sld [smem:[#allocation9_spill]] }
  0x1b   :  { %v3918_v26 = vpack.c.bf16 %v106_v25, %v105_v24  ;;  %v325_v57 = vld [vmem:[%s5180_s9 + $0x8] sm:$0xff]  ;;  %v326_v9 = vld [vmem:[%s5180_s9 + $0x10] sm:$0xff]  ;;  %v327_v10 = vld [vmem:[%s5180_s9 + $0x18] sm:$0xff]  ;;  %vm889_vm3 = vcmp.ge.s32.totalorder %v4474_v28, 16  ;;  %vm890_vm4 = vcmp.lt.s32.totalorder %v4474_v28, 24  ;;  %vm497_vm5 = vcmp.lt.s32.totalorder %v4474_v28, 8 }
  0x1c   :  { %v3930_v58 = vpack.c.bf16 %v325_v57, %v324_v56  ;;  %v3934_v13 = vpack.c.bf16 %v327_v10, %v326_v9  ;;  %v411_v15 = vld [vmem:[%s5182_s11 + $0x8] sm:$0xff]  ;;  %v413_v18 = vld [vmem:[%s5182_s11 + $0x18] sm:$0xff]  ;;  %vm4550_vm6 = vmand %vm889_vm3, %vm890_vm4  ;;  %vm615_vm8 = vcmp.ge.s32.totalorder %v4474_v28, 8  ;;  %vm616_vm9 = vcmp.lt.s32.totalorder %v4474_v28, 16 }
  0x1d   :  { %3901 = vmatpush3.bf16.msra.mxu0 %v3898_v11  ;;  %v107_v32 = vld [vmem:[%s5214_s6] sm:$0xff]  ;;  %v108_v34 = vld [vmem:[%s5214_s6 + $0x8] sm:$0xff]  ;;  %vm4569_vm7 = vmpackc.low %vm188_vm2, %vm188_vm2  ;;  %vm1084_vm15 = vcmp.ge.s32.totalorder %v4474_v28, 24  ;;  %vm4297_vm4 = vmmov 0  }
  0x1e   :  { %3903 = vmatprep.subr.bf16.mxu0 %v3902_v14  ;;  %v232_v50 = vld [vmem:[%s5215_s3] sm:$0xff]  ;;  %v233_v51 = vld [vmem:[%s5215_s3 + $0x8] sm:$0xff]  ;;  %v234_v52 = vld [vmem:[%s5215_s3 + $0x10] sm:$0xff] }
  0x1f   :  { %v3922_v53 = vpack.c.bf16 %v233_v51, %v232_v50  ;;  %v235_v54 = vld [vmem:[%s5215_s3 + $0x18] sm:$0xff]  ;;  %v3206_v2 = vld [vmem:[%s5216_s7] ss:$0 sm:$0xff]  ;;  %vm4597_vm10 = vmand %vm615_vm8, %vm616_vm9 }
  0x20   :  { %v3926_v55 = vpack.c.bf16 %v235_v54, %v234_v52  ;;  %v3207_v4 = vld [vmem:[%s5217_s0] ss:$0 sm:$0xff]  ;;  %vm4612_vm11 = vmpackc.low %vm4597_vm10, %vm4597_vm10 }
  0x21   :  { %3905 = vmatpush3.bf16.msra.mxu0 %v3902_v14  ;;  %3923 = vmatprep.subr.bf16.mxu1 %v3922_v53  ;;  %v410_v14 = vld [vmem:[%s5182_s11] sm:$0xff]  ;;  %vm4634_vm12 = vmpackc.low %vm497_vm5, %vm497_vm5 }
  0x22   :  { %3907 = vmatprep.subr.bf16.mxu0 %v3906_v17  ;;  %3925 = vmatpush3.bf16.msra.mxu1 %v3922_v53  ;;  %v3938_v16 = vpack.c.bf16 %v411_v15, %v410_v14  ;;  %v3211_v27 = vld [vmem:[%s5181_s10] ss:$0 sm:$0xff]  ;;  %vm4677_vm14 = vmpackc.low %vm4550_vm6, %vm4550_vm6 }
  0x23   :  { %3927 = vmatprep.subr.bf16.mxu1 %v3926_v55  ;;  %v4648_v56 = vld [vmem:[%s5228_s2] sm:$0xff] }
  0x25   :  { %3909 = vmatpush3.bf16.msra.mxu0 %v3906_v17  ;;  %v412_v17 = vld [vmem:[%s5182_s11 + $0x10] sm:$0xff] }
  0x26   :  { %3911 = vmatprep.subr.bf16.mxu0 %v3910_v20  ;;  %3929 = vmatpush3.bf16.msra.mxu1 %v3926_v55  ;;  %v3942_v19 = vpack.c.bf16 %v413_v18, %v412_v17 }
  0x27   :  { %3931 = vmatprep.subr.bf16.mxu1 %v3930_v58 }
  0x29   :  { %3913 = vmatpush3.bf16.msra.mxu0 %v3910_v20  ;;  %v3208_v20 = vld [vmem:[%s5179_s8] ss:$0 sm:$0xff] }
  0x2a   :  { %3915 = vmatprep.subr.bf16.mxu0 %v3914_v23 }
  0x2d   :  { %3917 = vmatpush3.bf16.msra.mxu0 %v3914_v23 }
  0x2e   :  { %3919 = vmatprep.subr.bf16.mxu0 %v3918_v26 }
  0x31   :  { %3921 = vmatpush3.bf16.msra.mxu0 %v3918_v26 }
  0x90   :  { %v81_v29 = vpop.permute.xlu0 %80 }
  0x91   :  { %vm85_vm0 = vcmp.eq.s32.totalorder %v4474_v28, %v81_v29 }
  0x92   :  { %3577 = vmatprep.mubr.msk.f32.mxu0 %vm85_vm0, %v4295_v30  ;;  %vm1085_vm0 = vcmp.lt.s32.totalorder %v4474_v28, 32 }
  0x94   :  { %v84_v31 = vpop.permute.xlu0 %83 }
  0x95   :  { %vm86_vm1 = vcmp.eq.s32.totalorder %v4474_v28, %v84_v31 }
  0x96   :  { %3578 = vmatmul.mubr.msk.f32.vlgmr.msra.gmra.mrb[0].mxu0 %vm86_vm1, %v4295_v30  ;;  %vm4699_vm1 = vmand %vm1084_vm15, %vm1085_vm0 }
  0x97   :  { %vm4710_vm3 = vmpackc.low %vm4699_vm1, %vm4699_vm1 }
 0x169   :  { %v3579_v33 = vpop.f32.mrb[0].mxu0 }
 0x16a   :  { %v175_v35 = vpop.f32.mrb[1].mxu0  ;;  %v4486_v37 = vadd.f32 %v3579_v33, %v108_v34 }
 0x16b   :  { %v4484_v36 = vadd.f32 %v175_v35, %v107_v32  ;;  %v3214_v35 = vld [vmem:[%s5183_s12] ss:$0 sm:$0xff] }
 0x16c   :  { %v192_v39 = vsel %vm188_vm2, %v4486_v37, 0.0 }
 0x16d   :  { %v189_v38 = vsel %vm188_vm2, %v4484_v36, 0.0 }
 0x16e   :  { %190 = vadd.xlane.f32.xlu1 %v189_v38 }
 0x172   :  { %193 = vadd.xlane.f32.xlu1 %v192_v39 }
 0x1fb   :  { %v191_v40 = vpop.xlane.xlu1 %190 }
 0x1fc   :  { %v196_v41 = vmul.f32 0.03125, %v191_v40 }
 0x1fe   :  { %v198_v42 = vsub.f32 %v4484_v36, %v196_v41 }
 0x1ff   :  { %v194_v43 = vpop.xlane.xlu1 %193 }
 0x200   :  { %v197_v44 = vmul.f32 0.03125, %v194_v43  ;;  %v200_v45 = vmul.f32 %v198_v42, %v198_v42 }
 0x202   :  { %v199_v46 = vsub.f32 %v4486_v37, %v197_v44  ;;  %v202_v47 = vsel %vm188_vm2, %v200_v45, 0.0 }
 0x203   :  { %203 = vadd.xlane.f32.xlu0 %v202_v47 }
 0x204   :  { %v201_v48 = vmul.f32 %v199_v46, %v199_v46 }
 0x206   :  { %v205_v49 = vsel %vm188_vm2, %v201_v48, 0.0 }
 0x207   :  { %206 = vadd.xlane.f32.xlu1 %v205_v49 }
 0x290   :  { %v204_v59 = vpop.xlane.xlu0 %203 }
 0x291   :  { %v208_v60 = vmul.f32 0.03125, %v204_v59  ;;  %v4654_v59 = vld [vmem:[%s5228_s2 + $0x8] sm:$0xff] }
 0x293   :  { %v210_v61 = vadd.f32 1e-05, %v208_v60 }
 0x294   :  { %v207_v62 = vpop.xlane.xlu1 %206 }
 0x295   :  { %4190 = vrsqrt.f32 %v210_v61  ;;  %v209_v63 = vmul.f32 0.03125, %v207_v62 }
 0x297   :  { %v211_v0 = vadd.f32 1e-05, %v209_v63 }
 0x299   :  { %4192 = vrsqrt.f32 %v211_v0 }
 0x29f   :  { %v4191_v1 = vpop.eup %4190 }
 0x2a0   :  { %v214_v3 = vmul.f32 %v4191_v1, %v198_v42 }
 0x2a2   :  { %v222_v5 = vmul.f32 %v3206_v2, %v214_v3 }
 0x2a3   :  { %v4193_v6 = vpop.eup %4192 }
 0x2a4   :  { %v215_v7 = vmul.f32 %v4193_v6, %v199_v46  ;;  %v230_v8 = vadd.f32 %v3207_v4, %v222_v5 }
 0x2a6   :  { %v223_v11 = vmul.f32 %v3206_v2, %v215_v7  ;;  %3588 = vmatprep.mubr.msk.f32.mxu1 %vm188_vm2, %v230_v8 }
 0x2a8   :  { %v231_v12 = vadd.f32 %v3207_v4, %v223_v11 }
 0x2aa   :  { %3589 = vmatmul.mubr.msk.f32.vlgmr.msra.gmra.mrb[0].mxu1 %vm188_vm2, %v231_v12 }
 0x2ab   :  { %3933 = vmatpush3.bf16.msra.mxu1 %v3930_v58  ;;  %3599 = vmatprep.mubr.msk.f32.mxu1 %vm188_vm2, %v230_v8 }
 0x2ac   :  { %3935 = vmatprep.subr.bf16.mxu1 %v3934_v13 }
 0x2af   :  { %3937 = vmatpush3.bf16.msra.mxu1 %v3934_v13 }
 0x2b0   :  { %3939 = vmatprep.subr.bf16.mxu1 %v3938_v16 }
 0x2b2   :  { %3600 = vmatmul.mubr.msk.f32.vlgmr.msra.gmra.mrb[2].mxu1 %vm188_vm2, %v231_v12 }
 0x2b3   :  { %3941 = vmatpush3.bf16.msra.mxu1 %v3938_v16  ;;  %3610 = vmatprep.mubr.msk.f32.mxu1 %vm188_vm2, %v230_v8 }
 0x2b4   :  { %3943 = vmatprep.subr.bf16.mxu1 %v3942_v19 }
 0x2b7   :  { %3945 = vmatpush3.bf16.msra.mxu1 %v3942_v19 }
 0x2ba   :  { %3611 = vmatmul.mubr.msk.f32.vlgmr.msra.gmra.mrb[4].mxu1 %vm188_vm2, %v231_v12 }
 0x37d   :  { %v3590_v21 = vpop.f32.mrb[0].mxu1 }
 0x37e   :  { %v315_v22 = vpop.f32.mrb[1].mxu1  ;;  %v4595_v39 = vadd.f32 %v3590_v21, %v3208_v20 }
 0x37f   :  { %v4554_v24 = vadd.f32 %v3208_v20, %v315_v22 }
 0x380   :  { %v502_v45 = vsel %vm497_vm5, %v4595_v39, 0.0  ;;  %v895_v46 = vsel %vm4550_vm6, %v4595_v39, 0.0  ;;  %v621_v49 = vsel %vm4597_vm10, %v4595_v39, 0.0 }
 0x381   :  { %v501_v25 = vsel %vm497_vm5, %v4554_v24, 0.0  ;;  %v894_v26 = vsel %vm4550_vm6, %v4554_v24, 0.0  ;;  %v620_v48 = vsel %vm4597_vm10, %v4554_v24, 0.0 }
 0x382   :  { %3617 = vmatprep.mubr.msk.f32.mxu1 %vm188_vm2, %v501_v25  ;;  %3645 = vmatprep.mubr.msk.f32.mxu0 %vm188_vm2, %v894_v26 }
 0x385   :  { %v3601_v29 = vpop.f32.mrb[2].mxu1 }
 0x386   :  { %v407_v30 = vadd.f32 %v3601_v29, %v3211_v27  ;;  %v401_v31 = vpop.f32.mrb[3].mxu1 }
 0x387   :  { %v402_v32 = vadd.f32 %v3211_v27, %v401_v31 }
 0x389   :  { %v4573_v34 = vpack.c.bf16 %v407_v30, %v402_v32 }
 0x38b   :  { %3948 = vmatprep.subr.msk.bf16.mxu1 %vm4569_vm7, %v4573_v34  ;;  %3972 = vmatprep.subr.msk.bf16.mxu0 %vm4569_vm7, %v4573_v34 }
 0x38c   :  { %3951 = vmatpush3.bf16.xpose.msk.msra.mxu1 %vm4569_vm7, %v4573_v34  ;;  %3975 = vmatpush3.bf16.xpose.msk.msra.mxu0 %vm4569_vm7, %v4573_v34 }
 0x38d   :  { %v3612_v38 = vpop.f32.mrb[4].mxu1  ;;  %3954 = vmatprep.subr.msk.bf16.mxu1 %vm4569_vm7, %v4573_v34 }
 0x38e   :  { %v493_v40 = vadd.f32 %v3612_v38, %v3214_v35  ;;  %v487_v41 = vpop.f32.mrb[5].mxu1 }
 0x38f   :  { %v488_v42 = vadd.f32 %v3214_v35, %v487_v41 }
 0x391   :  { %v4601_v44 = vpack.c.bf16 %v493_v40, %v488_v42 }
 0x393   :  { %3618 = vmatmul.mubr.msk.f32.vlgmr.msra.gmra.mrb[6].mxu1 %vm188_vm2, %v502_v45  ;;  %3646 = vmatmul.mubr.msk.f32.vlgmr.msra.gmra.mrb[2].mxu0 %vm188_vm2, %v895_v46 }
 0x394   :  { %3957 = vmatpush3.bf16.xpose.msk.msra.mxu1 %vm4569_vm7, %v4573_v34  ;;  %3624 = vmatprep.mubr.msk.f32.mxu1 %vm188_vm2, %v620_v48 }
 0x395   :  { %3960 = vmatprep.subr.msk.bf16.mxu1 %vm4612_vm11, %v4601_v44 }
 0x39b   :  { %3625 = vmatmul.mubr.msk.f32.vlgmr.msra.gmra.mrb[8].mxu1 %vm188_vm2, %v621_v49 }
 0x39c   :  { %3963 = vmatpush3.bf16.msk.msra.mxu1 %vm4612_vm11, %v4601_v44 }
 0x39d   :  { %3966 = vmatprep.subr.msk.bf16.mxu1 %vm4634_vm12, %v4601_v44 }
 0x466   :  { %v3619_v51 = vpop.f32.mrb[6].mxu1  ;;  %v3647_v52 = vpop.f32.mrb[2].mxu0 }
 0x467   :  { %v583_v53 = vpop.f32.mrb[7].mxu1  ;;  %v970_v54 = vpop.f32.mrb[3].mxu0  ;;  %v589_v0 = vadd.f32 %v3619_v51, %v4654_v59  ;;  %v976_v4 = vadd.f32 %v3647_v52, %v4654_v59 }
 0x468   :  { %v584_v62 = vadd.f32 %v583_v53, %v4648_v56  ;;  %v971_v2 = vadd.f32 %v970_v54, %v4648_v56 }
 0x469   :  { %v596_v3 = vsel %vm592_vm13, %v589_v0, -inf  ;;  %v982_v6 = vsel %vm592_vm13, %v976_v4, -inf }
 0x46a   :  { %v593_v1 = vsel %vm592_vm13, %v584_v62, -inf  ;;  %v979_v5 = vsel %vm592_vm13, %v971_v2, -inf }
 0x46e   :  { %v3626_v55 = vpop.f32.mrb[8].mxu1 }
 0x46f   :  { %v696_v57 = vpop.f32.mrb[9].mxu1  ;;  %v702_v60 = vadd.f32 %v3626_v55, %v4654_v59 }
 0x470   :  { %v697_v58 = vadd.f32 %v696_v57, %v4648_v56 }
 0x471   :  { %v708_v63 = vsel %vm592_vm13, %v702_v60, -inf }
 0x472   :  { %v705_v61 = vsel %vm592_vm13, %v697_v58, -inf }
 0x473   :  { %706 = vmax.xlane.f32.xlu1 %v705_v61 }
 0x477   :  { %709 = vmax.xlane.f32.xlu1 %v708_v63 }
 0x47b   :  { %594 = vmax.xlane.f32.xlu1 %v593_v1 }
 0x47f   :  { %597 = vmax.xlane.f32.xlu1 %v596_v3 }
 0x483   :  { %980 = vmax.xlane.f32.xlu1 %v979_v5 }
 0x487   :  { %983 = vmax.xlane.f32.xlu1 %v982_v6 }
 0x500   :  { %v707_v7 = vpop.xlane.xlu1 %706 }
 0x501   :  { %v711_v8 = vsub.f32 %v697_v58, %v707_v7  ;;  %v1089_v7 = vsel %vm4699_vm1, %v4554_v24, 0.0  ;;  %v1090_v24 = vsel %vm4699_vm1, %v4595_v39, 0.0 }
 0x503   :  { %v713_v9 = vmul.f32 1.442695, %v711_v8 }
 0x504   :  { %v710_v10 = vpop.xlane.xlu1 %709 }
 0x505   :  { %4194 = vpow2.f32 %v713_v9  ;;  %v712_v11 = vsub.f32 %v702_v60, %v710_v10 }
 0x507   :  { %v715_v12 = vmul.f32 1.442695, %v712_v11 }
 0x508   :  { %v595_v13 = vpop.xlane.xlu1 %594 }
 0x509   :  { %4196 = vpow2.f32 %v715_v12  ;;  %v599_v14 = vsub.f32 %v584_v62, %v595_v13 }
 0x50b   :  { %v601_v15 = vmul.f32 1.442695, %v599_v14 }
 0x50c   :  { %v598_v16 = vpop.xlane.xlu1 %597 }
 0x50d   :  { %4198 = vpow2.f32 %v601_v15  ;;  %v600_v17 = vsub.f32 %v589_v0, %v598_v16 }
 0x50f   :  { %v4195_v18 = vpop.eup %4194  ;;  %v603_v19 = vmul.f32 1.442695, %v600_v17 }
 0x510   :  { %v981_v20 = vpop.xlane.xlu1 %980  ;;  %v717_v21 = vsel %vm592_vm13, %v4195_v18, 0.0 }
 0x511   :  { %4200 = vpow2.f32 %v603_v19  ;;  %v985_v22 = vsub.f32 %v971_v2, %v981_v20  ;;  %718 = vadd.xlane.f32.xlu1 %v717_v21 }
 0x513   :  { %v4197_v25 = vpop.eup %4196  ;;  %v987_v26 = vmul.f32 1.442695, %v985_v22  ;;  %v1279_v22 = vld [vmem:[%s5184_s13] sm:$0xff] }
 0x514   :  { %v984_v27 = vpop.xlane.xlu1 %983  ;;  %v720_v29 = vsel %vm592_vm13, %v4197_v25, 0.0 }
 0x515   :  { %4202 = vpow2.f32 %v987_v26  ;;  %v986_v30 = vsub.f32 %v976_v4, %v984_v27  ;;  %721 = vadd.xlane.f32.xlu0 %v720_v29  ;;  %v1281_v26 = vld [vmem:[%s5184_s13 + $0x10] sm:$0xff]  ;;  %v1282_v29 = vld [vmem:[%s5184_s13 + $0x18] sm:$0xff] }
 0x517   :  { %v4199_v31 = vpop.eup %4198  ;;  %v989_v32 = vmul.f32 1.442695, %v986_v30  ;;  %v3998_v30 = vpack.c.bf16 %v1282_v29, %v1281_v26  ;;  %v1522_v26 = vld [vmem:[%s5190_s19 + $0x58] sm:$0xff]  ;;  %v1523_v29 = vld [vmem:[%s5190_s19 + $0x60] sm:$0xff] }
 0x518   :  { %v605_v35 = vsel %vm592_vm13, %v4199_v31, 0.0 }
 0x519   :  { %4204 = vpow2.f32 %v989_v32  ;;  %606 = vadd.xlane.f32.xlu1 %v605_v35 }
 0x51b   :  { %v4201_v38 = vpop.eup %4200 }
 0x51c   :  { %v608_v40 = vsel %vm592_vm13, %v4201_v38, 0.0 }
 0x51d   :  { %609 = vadd.xlane.f32.xlu0 %v608_v40 }
 0x51f   :  { %v4203_v41 = vpop.eup %4202 }
 0x520   :  { %v991_v42 = vsel %vm592_vm13, %v4203_v41, 0.0 }
 0x521   :  { %992 = vadd.xlane.f32.xlu1 %v991_v42 }
 0x523   :  { %v4205_v45 = vpop.eup %4204 }
 0x524   :  { %v994_v46 = vsel %vm592_vm13, %v4205_v45, 0.0 }
 0x525   :  { %995 = vadd.xlane.f32.xlu0 %v994_v46  ;;  %v3249_v46 = vld [vmem:[%s5185_s14] ss:$0 sm:$0xff] }
 0x59e   :  { %v719_v48 = vpop.xlane.xlu1 %718 }
 0x59f   :  { %4206 = vrcp.f32 %v719_v48 }
 0x5a2   :  { %v722_v49 = vpop.xlane.xlu0 %721 }
 0x5a3   :  { %4208 = vrcp.f32 %v722_v49 }
 0x5a6   :  { %v607_v51 = vpop.xlane.xlu1 %606 }
 0x5a7   :  { %4210 = vrcp.f32 %v607_v51 }
 0x5a9   :  { %v4207_v52 = vpop.eup %4206 }
 0x5aa   :  { %v610_v53 = vpop.xlane.xlu0 %609  ;;  %v725_v54 = vmul.f32 %v4207_v52, %v4195_v18 }
 0x5ab   :  { %4212 = vrcp.f32 %v610_v53 }
 0x5ac   :  { %3631 = vmatprep.mubr.msk.f32.mxu1 %vm592_vm13, %v725_v54 }
 0x5ad   :  { %v4209_v55 = vpop.eup %4208 }
 0x5ae   :  { %v726_v57 = vmul.f32 %v4209_v55, %v4197_v25  ;;  %v993_v58 = vpop.xlane.xlu1 %992  ;;  %v1280_v25 = vld [vmem:[%s5184_s13 + $0x8] sm:$0xff] }
 0x5af   :  { %4214 = vrcp.f32 %v993_v58  ;;  %v3994_v27 = vpack.c.bf16 %v1280_v25, %v1279_v22  ;;  %v1521_v25 = vld [vmem:[%s5190_s19 + $0x50] sm:$0xff] }
 0x5b0   :  { %3632 = vmatmul.mubr.msk.f32.vlgmr.msra.gmra.mrb[10].mxu1 %vm592_vm13, %v726_v57 }
 0x5b1   :  { %v4211_v61 = vpop.eup %4210  ;;  %3969 = vmatpush3.bf16.msk.msra.mxu1 %vm4634_vm12, %v4601_v44  ;;  %3995 = vmatprep.subr.bf16.mxu0 %v3994_v27 }
 0x5b2   :  { %3978 = vmatprep.subr.msk.bf16.mxu1 %vm4677_vm14, %v4601_v44  ;;  %v996_v62 = vpop.xlane.xlu0 %995  ;;  %v613_v63 = vmul.f32 %v4211_v61, %v4199_v31  ;;  %3997 = vmatpush3.bf16.msra.mxu0 %v3994_v27  ;;  %v4030_v27 = vpack.c.bf16 %v1522_v26, %v1521_v25  ;;  %v3264_v26 = vld [vmem:[%s5215_s3 + $0x30] sm:$0xff] }
 0x5b3   :  { %4216 = vrcp.f32 %v996_v62  ;;  %3999 = vmatprep.subr.bf16.mxu0 %v3998_v30 }
 0x5b4   :  { %3638 = vmatprep.mubr.msk.f32.mxu1 %vm592_vm13, %v613_v63 }
 0x5b5   :  { %v4213_v0 = vpop.eup %4212 }
 0x5b6   :  { %v614_v1 = vmul.f32 %v4213_v0, %v4201_v38  ;;  %4001 = vmatpush3.bf16.msra.mxu0 %v3998_v30  ;;  %v1524_v30 = vld [vmem:[%s5190_s19 + $0x68] sm:$0xff] }
 0x5b8   :  { %3639 = vmatmul.mubr.msk.f32.vlgmr.msra.gmra.mrb[10].mxu1 %vm592_vm13, %v614_v1 }
 0x5b9   :  { %v4215_v2 = vpop.eup %4214  ;;  %3981 = vmatpush3.bf16.msk.msra.mxu1 %vm4677_vm14, %v4601_v44 }
 0x5ba   :  { %3984 = vmatprep.subr.msk.bf16.mxu1 %vm4569_vm7, %v4573_v34  ;;  %v999_v3 = vmul.f32 %v4215_v2, %v4203_v41 }
 0x5bc   :  { %3652 = vmatprep.mubr.msk.f32.mxu1 %vm592_vm13, %v999_v3 }
 0x5bd   :  { %v4217_v4 = vpop.eup %4216 }
 0x5be   :  { %v1000_v6 = vmul.f32 %v4217_v4, %v4205_v45  ;;  %v1417_v4 = vld [vmem:[%s5188_s17] sm:$0xff] }
 0x5c0   :  { %3653 = vmatmul.mubr.msk.f32.vlgmr.msra.gmra.mrb[10].mxu1 %vm592_vm13, %v1000_v6  ;;  %v1418_v6 = vld [vmem:[%s5188_s17 + $0x8] sm:$0xff] }
 0x5c1   :  { %3659 = vmatprep.mubr.msk.f32.mxu1 %vm188_vm2, %v1089_v7  ;;  %v4002_v7 = vpack.c.bf16 %v1418_v6, %v1417_v4 }
 0x5c2   :  { %3987 = vmatpush3.bf16.xpose.msk.msra.mxu1 %vm4569_vm7, %v4573_v34 }
 0x5c3   :  { %3990 = vmatprep.subr.msk.bf16.mxu1 %vm4710_vm3, %v4601_v44  ;;  %4003 = vmatprep.subr.bf16.mxu0 %v4002_v7 }
 0x5c9   :  { %3660 = vmatmul.mubr.msk.f32.vlgmr.msra.gmra.mrb[12].mxu1 %vm188_vm2, %v1090_v24  ;;  %v1419_v24 = vld [vmem:[%s5188_s17 + $0x10] sm:$0xff] }
 0x5ca   :  { %3993 = vmatpush3.bf16.msk.msra.mxu1 %vm4710_vm3, %v4601_v44 }
 0x69c   :  { %v3661_v9 = vpop.f32.mrb[12].mxu1 }
 0x69d   :  { %v1171_v10 = vadd.f32 %v3661_v9, %v4654_v59  ;;  %v1165_v11 = vpop.f32.mrb[13].mxu1  ;;  %v1420_v9 = vld [vmem:[%s5188_s17 + $0x18] sm:$0xff] }
 0x69e   :  { %v1166_v34 = vadd.f32 %v1165_v11, %v4648_v56  ;;  %v1511_v11 = vld [vmem:[%s5190_s19] sm:$0xff] }
 0x69f   :  { %v1177_v12 = vsel %vm592_vm13, %v1171_v10, -inf }
 0x6a0   :  { %1178 = vmax.xlane.f32.xlu0 %v1177_v12  ;;  %v1174_v13 = vsel %vm592_vm13, %v1166_v34, -inf  ;;  %v1513_v12 = vld [vmem:[%s5190_s19 + $0x10] sm:$0xff] }
 0x6a1   :  { %1175 = vmax.xlane.f32.xlu1 %v1174_v13 }
 0x72d   :  { %v1179_v14 = vpop.xlane.xlu0 %1178 }
 0x72e   :  { %v1181_v39 = vsub.f32 %v1171_v10, %v1179_v14  ;;  %v1176_v15 = vpop.xlane.xlu1 %1175  ;;  %v4006_v10 = vpack.c.bf16 %v1420_v9, %v1419_v24  ;;  %v1514_v14 = vld [vmem:[%s5190_s19 + $0x18] sm:$0xff] }
 0x72f   :  { %v1180_v16 = vsub.f32 %v1166_v34, %v1176_v15  ;;  %v1512_v34 = vld [vmem:[%s5190_s19 + $0x8] sm:$0xff]  ;;  %v1515_v15 = vld [vmem:[%s5190_s19 + $0x20] sm:$0xff] }
 0x730   :  { %v1184_v17 = vmul.f32 1.442695, %v1181_v39  ;;  %v4010_v13 = vpack.c.bf16 %v1512_v34, %v1511_v11  ;;  %v4014_v39 = vpack.c.bf16 %v1514_v14, %v1513_v12 }
 0x731   :  { %v1182_v18 = vmul.f32 1.442695, %v1180_v16  ;;  %v1516_v16 = vld [vmem:[%s5190_s19 + $0x28] sm:$0xff] }
 0x732   :  { %4218 = vpow2.f32 %v1184_v17  ;;  %4011 = vmatprep.subr.bf16.mxu1 %v4010_v13  ;;  %v4018_v17 = vpack.c.bf16 %v1516_v16, %v1515_v15 }
 0x733   :  { %4220 = vpow2.f32 %v1182_v18  ;;  %v1517_v18 = vld [vmem:[%s5190_s19 + $0x30] sm:$0xff] }
 0x73c   :  { %v4219_v44 = vpop.eup %4218 }
 0x73d   :  { %v4221_v19 = vpop.eup %4220  ;;  %v1189_v20 = vsel %vm592_vm13, %v4219_v44, 0.0 }
 0x73e   :  { %1190 = vadd.xlane.f32.xlu0 %v1189_v20  ;;  %v1186_v21 = vsel %vm592_vm13, %v4221_v19, 0.0  ;;  %v1519_v20 = vld [vmem:[%s5190_s19 + $0x40] sm:$0xff] }
 0x73f   :  { %1187 = vadd.xlane.f32.xlu1 %v1186_v21  ;;  %v1520_v21 = vld [vmem:[%s5190_s19 + $0x48] sm:$0xff] }
 0x740   :  { %v4026_v22 = vpack.c.bf16 %v1520_v21, %v1519_v20  ;;  %v3262_v21 = vld [vmem:[%s5215_s3 + $0x20] sm:$0xff] }
 0x7cb   :  { %v1191_v31 = vpop.xlane.xlu0 %1190 }
 0x7cc   :  { %4222 = vrcp.f32 %v1191_v31  ;;  %v1188_v32 = vpop.xlane.xlu1 %1187  ;;  %v4034_v31 = vpack.c.bf16 %v1524_v30, %v1523_v29  ;;  %v3270_v30 = vld [vmem:[%s5180_s9 + $0x20] sm:$0xff] }
 0x7cd   :  { %4224 = vrcp.f32 %v1188_v32 }
 0x7d6   :  { %v4223_v35 = vpop.eup %4222 }
 0x7d7   :  { %v4225_v38 = vpop.eup %4224  ;;  %v1195_v41 = vmul.f32 %v4223_v35, %v4219_v44  ;;  %v1518_v44 = vld [vmem:[%s5190_s19 + $0x38] sm:$0xff] }
 0x7d8   :  { %v1194_v40 = vmul.f32 %v4225_v38, %v4221_v19  ;;  %v4022_v19 = vpack.c.bf16 %v1518_v44, %v1517_v18 }
 0x7da   :  { %3666 = vmatprep.mubr.msk.f32.mxu1 %vm592_vm13, %v1194_v40 }
 0x7db   :  { %3667 = vmatmul.mubr.msk.f32.vlgmr.msra.gmra.mrb[10].mxu1 %vm592_vm13, %v1195_v41 }
 0x7dc   :  { %4013 = vmatpush3.bf16.msra.mxu1 %v4010_v13 }
 0x7dd   :  { %4015 = vmatprep.subr.bf16.mxu1 %v4014_v39 }
 0x7e0   :  { %4017 = vmatpush3.bf16.msra.mxu1 %v4014_v39 }
 0x7e1   :  { %4019 = vmatprep.subr.bf16.mxu1 %v4018_v17 }
 0x7e4   :  { %4021 = vmatpush3.bf16.msra.mxu1 %v4018_v17 }
 0x7e5   :  { %4023 = vmatprep.subr.bf16.mxu1 %v4022_v19 }
 0x7e8   :  { %4025 = vmatpush3.bf16.msra.mxu1 %v4022_v19 }
 0x7e9   :  { %4027 = vmatprep.subr.bf16.mxu1 %v4026_v22 }
 0x7ec   :  { %4029 = vmatpush3.bf16.msra.mxu1 %v4026_v22  ;;  %v3263_v22 = vld [vmem:[%s5215_s3 + $0x28] sm:$0xff] }
 0x7ed   :  { %4031 = vmatprep.subr.bf16.mxu1 %v4030_v27  ;;  %v4042_v25 = vpack.c.bf16 %v3263_v22, %v3262_v21 }
 0x7f0   :  { %4033 = vmatpush3.bf16.msra.mxu1 %v4030_v27  ;;  %v3265_v27 = vld [vmem:[%s5215_s3 + $0x38] sm:$0xff] }
 0x7f1   :  { %4035 = vmatprep.subr.bf16.mxu1 %v4034_v31  ;;  %v4046_v29 = vpack.c.bf16 %v3265_v27, %v3264_v26 }
 0x7f4   :  { %4037 = vmatpush3.bf16.msra.mxu1 %v4034_v31  ;;  %v3271_v31 = vld [vmem:[%s5180_s9 + $0x28] sm:$0xff] }
 0x8ae   :  { %v3668_v42 = vpop.f32.mrb[10].mxu1 }
 0x8af   :  { %v1268_v45 = vpop.f32.mrb[11].mxu1 }
 0x8b0   :  { %3677 = vmatprep.mubr.msk.f32.mxu0 %vm188_vm2, %v1268_v45 }
 0x8b1   :  { %3678 = vmatmul.mubr.msk.f32.vlgmr.msra.gmra.mrb[4].mxu0 %vm188_vm2, %v3668_v42 }
 0x8b2   :  { %4005 = vmatpush3.bf16.msra.mxu0 %v4002_v7  ;;  %v3257_v7 = vld [vmem:[%s5191_s20] ss:$0 sm:$0xff] }
 0x8b3   :  { %4007 = vmatprep.subr.bf16.mxu0 %v4006_v10 }
 0x8b6   :  { %4009 = vmatpush3.bf16.msra.mxu0 %v4006_v10 }
 0x8b7   :  { %4043 = vmatprep.subr.bf16.mxu0 %v4042_v25 }
 0x984   :  { %v3679_v48 = vpop.f32.mrb[4].mxu0 }
 0x985   :  { %v1368_v49 = vadd.f32 %v3679_v48, %v3249_v46  ;;  %v1362_v51 = vpop.f32.mrb[5].mxu0 }
 0x986   :  { %v1363_v52 = vadd.f32 %v3249_v46, %v1362_v51  ;;  %v3252_v46 = vld [vmem:[%s5186_s15] ss:$0 sm:$0xff] }
 0x987   :  { %v4754_v53 = vadd.f32 %v1368_v49, %v4486_v37 }
 0x988   :  { %v4757_v54 = vadd.f32 %v1363_v52, %v4484_v36  ;;  %v3253_v52 = vld [vmem:[%s5187_s16] ss:$0 sm:$0xff] }
 0x989   :  { %v1378_v55 = vsel %vm188_vm2, %v4754_v53, 0.0 }
 0x98a   :  { %1379 = vadd.xlane.f32.xlu0 %v1378_v55  ;;  %v1375_v57 = vsel %vm188_vm2, %v4757_v54, 0.0 }
 0x98b   :  { %1376 = vadd.xlane.f32.xlu1 %v1375_v57 }
 0xa17   :  { %v1380_v58 = vpop.xlane.xlu0 %1379 }
 0xa18   :  { %v1382_v61 = vmul.f32 0.03125, %v1380_v58  ;;  %v1377_v62 = vpop.xlane.xlu1 %1376 }
 0xa19   :  { %v1381_v63 = vmul.f32 0.03125, %v1377_v62  ;;  %v1525_v62 = vld [vmem:[%s5190_s19 + $0x70] sm:$0xff] }
 0xa1a   :  { %v4764_v0 = vsub.f32 %v4754_v53, %v1382_v61 }
 0xa1b   :  { %v4767_v37 = vsub.f32 %v4757_v54, %v1381_v63  ;;  %v1526_v63 = vld [vmem:[%s5190_s19 + $0x78] sm:$0xff] }
 0xa1c   :  { %v1386_v36 = vmul.f32 %v4764_v0, %v4764_v0 }
 0xa1d   :  { %v1385_v1 = vmul.f32 %v4767_v37, %v4767_v37 }
 0xa1e   :  { %v1390_v2 = vsel %vm188_vm2, %v1386_v36, 0.0 }
 0xa1f   :  { %1391 = vadd.xlane.f32.xlu0 %v1390_v2  ;;  %v1387_v3 = vsel %vm188_vm2, %v1385_v1, 0.0 }
 0xa20   :  { %1388 = vadd.xlane.f32.xlu1 %v1387_v3 }
 0xaac   :  { %v1392_v32 = vpop.xlane.xlu0 %1391 }
 0xaad   :  { %v1394_v35 = vmul.f32 0.03125, %v1392_v32  ;;  %v1389_v38 = vpop.xlane.xlu1 %1388  ;;  %v4050_v32 = vpack.c.bf16 %v3271_v31, %v3270_v30 }
 0xaae   :  { %v1393_v40 = vmul.f32 0.03125, %v1389_v38 }
 0xaaf   :  { %v1396_v41 = vadd.f32 1e-05, %v1394_v35 }
 0xab0   :  { %v1395_v42 = vadd.f32 1e-05, %v1393_v40 }
 0xab1   :  { %4226 = vrsqrt.f32 %v1396_v41 }
 0xab2   :  { %4228 = vrsqrt.f32 %v1395_v42 }
 0xabb   :  { %v4227_v45 = vpop.eup %4226 }
 0xabc   :  { %v4229_v48 = vpop.eup %4228  ;;  %v1400_v49 = vmul.f32 %v4227_v45, %v4764_v0  ;;  %v4038_v0 = vpack.c.bf16 %v1526_v63, %v1525_v62  ;;  %v3273_v62 = vld [vmem:[%s5180_s9 + $0x38] sm:$0xff] }
 0xabd   :  { %v1399_v51 = vmul.f32 %v4229_v48, %v4767_v37  ;;  %v3254_v37 = vld [vmem:[%s5235_s30] ss:$0 sm:$0xff]  ;;  %v3260_v48 = vld [vmem:[%s5216_s7 + $0x1] ss:$0 sm:$0xff] }
 0xabe   :  { %v1408_v55 = vmul.f32 %v3252_v46, %v1400_v49  ;;  %4039 = vmatprep.subr.bf16.mxu1 %v4038_v0 }
 0xabf   :  { %v1407_v57 = vmul.f32 %v3252_v46, %v1399_v51  ;;  %4041 = vmatpush3.bf16.msra.mxu1 %v4038_v0 }
 0xac0   :  { %v1416_v61 = vadd.f32 %v3253_v52, %v1408_v55  ;;  %v3261_v55 = vld [vmem:[%s5217_s0 + $0x1] ss:$0 sm:$0xff] }
 0xac1   :  { %v1415_v58 = vadd.f32 %v3253_v52, %v1407_v57 }
 0xac3   :  { %3688 = vmatprep.mubr.msk.f32.mxu0 %vm188_vm2, %v1415_v58 }
 0xac4   :  { %3689 = vmatmul.mubr.msk.f32.vlgmr.msra.gmra.mrb[6].mxu0 %vm188_vm2, %v1416_v61  ;;  %v3272_v61 = vld [vmem:[%s5180_s9 + $0x30] sm:$0xff] }
 0xac5   :  { %4045 = vmatpush3.bf16.msra.mxu0 %v4042_v25 }
 0xac6   :  { %4047 = vmatprep.subr.bf16.mxu0 %v4046_v29 }
 0xac9   :  { %4049 = vmatpush3.bf16.msra.mxu0 %v4046_v29 }
 0xaca   :  { %4051 = vmatprep.subr.bf16.mxu0 %v4050_v32 }
 0xb97   :  { %v3690_v36 = vpop.f32.mrb[6].mxu0 }
 0xb98   :  { %v1506_v1 = vadd.f32 %v3690_v36, %v3254_v37  ;;  %v1500_v2 = vpop.f32.mrb[7].mxu0  ;;  %v3278_v36 = vld [vmem:[%s5182_s11 + $0x20] sm:$0xff] }
 0xb99   :  { %v1501_v3 = vadd.f32 %v3254_v37, %v1500_v2  ;;  %v4054_v37 = vpack.c.bf16 %v3273_v62, %v3272_v61 }
 0xb9a   :  { %v1510_v6 = vmax.f32 %v1506_v1, 0.0  ;;  %v3279_v1 = vld [vmem:[%s5182_s11 + $0x28] sm:$0xff] }
 0xb9b   :  { %v1509_v4 = vmax.f32 %v1501_v3, 0.0  ;;  %v4058_v2 = vpack.c.bf16 %v3279_v1, %v3278_v36  ;;  %v3280_v3 = vld [vmem:[%s5182_s11 + $0x30] sm:$0xff] }
 0xb9d   :  { %3723 = vmatprep.mubr.f32.mxu1 %v1509_v4  ;;  %v3281_v4 = vld [vmem:[%s5182_s11 + $0x38] sm:$0xff] }
 0xb9e   :  { %3724 = vmatmul.mubr.f32.vlgmr.msra.gmra.mrb[14].mxu1 %v1510_v6  ;;  %v4062_v6 = vpack.c.bf16 %v3281_v4, %v3280_v3 }
 0xc71   :  { %v3725_v24 = vpop.f32.mrb[14].mxu1 }
 0xc72   :  { %v1606_v9 = vadd.f32 %v3725_v24, %v3257_v7  ;;  %v1600_v10 = vpop.f32.mrb[15].mxu1 }
 0xc73   :  { %v1601_v11 = vadd.f32 %v3257_v7, %v1600_v10  ;;  %v3267_v7 = vld [vmem:[%s5179_s8 + $0x1] ss:$0 sm:$0xff]  ;;  %s4299_s8 = smov [#allocation2]  }
 0xc74   :  { %v4852_v34 = vadd.f32 %v1606_v9, %v4754_v53  ;;  %s3194_s26 = sshll.u32 %s4299_s8, 4  ;;  %s3195_s26 = int_to_ptr.vmem [resolvable:$true] %s3194_s26 }
 0xc75   :  { %v4855_v12 = vadd.f32 %v1601_v11, %v4757_v54  ;;  %p4275_p1 = scmp.lt.s32.totalorder %s3195_s26, %s3195_s26 }
 0xc76   :  { %v1618_v13 = vsel %vm188_vm2, %v4852_v34, 0.0 }
 0xc77   :  { %1619 = vadd.xlane.f32.xlu0 %v1618_v13  ;;  %v1615_v14 = vsel %vm188_vm2, %v4855_v12, 0.0 }
 0xc78   :  { %1616 = vadd.xlane.f32.xlu1 %v1615_v14  ;;  %v3275_v14 = vld [vmem:[%s5181_s10 + $0x1] ss:$0 sm:$0xff] }
 0xd04   :  { %v1620_v39 = vpop.xlane.xlu0 %1619 }
 0xd05   :  { %v1622_v15 = vmul.f32 0.03125, %v1620_v39  ;;  %v1617_v16 = vpop.xlane.xlu1 %1616 }
 0xd06   :  { %v1621_v17 = vmul.f32 0.03125, %v1617_v16 }
 0xd07   :  { %v1624_v18 = vsub.f32 %v4852_v34, %v1622_v15 }
 0xd08   :  { %v1623_v53 = vsub.f32 %v4855_v12, %v1621_v17 }
 0xd09   :  { %v1626_v44 = vmul.f32 %v1624_v18, %v1624_v18 }
 0xd0a   :  { %v1625_v19 = vmul.f32 %v1623_v53, %v1623_v53 }
 0xd0b   :  { %v1630_v54 = vsel %vm188_vm2, %v1626_v44, 0.0 }
 0xd0c   :  { %1631 = vadd.xlane.f32.xlu0 %v1630_v54  ;;  %v1627_v20 = vsel %vm188_vm2, %v1625_v19, 0.0 }
 0xd0d   :  { %1628 = vadd.xlane.f32.xlu1 %v1627_v20 }
 0xd99   :  { %v1632_v35 = vpop.xlane.xlu0 %1631 }
 0xd9a   :  { %v1634_v38 = vmul.f32 0.03125, %v1632_v35  ;;  %v1629_v40 = vpop.xlane.xlu1 %1628 }
 0xd9b   :  { %v1633_v41 = vmul.f32 0.03125, %v1629_v40 }
 0xd9c   :  { %v1636_v42 = vadd.f32 1e-05, %v1634_v38 }
 0xd9d   :  { %v1635_v45 = vadd.f32 1e-05, %v1633_v41 }
 0xd9e   :  { %4230 = vrsqrt.f32 %v1636_v42 }
 0xd9f   :  { %4232 = vrsqrt.f32 %v1635_v45 }
 0xda8   :  { %v4231_v46 = vpop.eup %4230 }
 0xda9   :  { %v4233_v49 = vpop.eup %4232  ;;  %v1640_v51 = vmul.f32 %v4231_v46, %v1624_v18 }
 0xdaa   :  { %v1639_v52 = vmul.f32 %v4233_v49, %v1623_v53  ;;  %v3283_v53 = vld [vmem:[%s5183_s12 + $0x1] ss:$0 sm:$0xff] }
 0xdab   :  { %v1648_v57 = vmul.f32 %v3260_v48, %v1640_v51 }
 0xdac   :  { %v1647_v58 = vmul.f32 %v3260_v48, %v1639_v52 }
 0xdad   :  { %v1656_v0 = vadd.f32 %v3261_v55, %v1648_v57 }
 0xdae   :  { %v1655_v63 = vadd.f32 %v3261_v55, %v1647_v58 }
 0xdb0   :  { %3734 = vmatprep.mubr.msk.f32.mxu0 %vm188_vm2, %v1655_v63 }
 0xdb1   :  { %3735 = vmatmul.mubr.msk.f32.vlgmr.msra.gmra.mrb[8].mxu0 %vm188_vm2, %v1656_v0 }
 0xdb2   :  { %4053 = vmatpush3.bf16.msra.mxu0 %v4050_v32  ;;  %3745 = vmatprep.mubr.msk.f32.mxu0 %vm188_vm2, %v1655_v63 }
 0xdb3   :  { %4055 = vmatprep.subr.bf16.mxu0 %v4054_v37 }
 0xdb6   :  { %4057 = vmatpush3.bf16.msra.mxu0 %v4054_v37 }
 0xdb7   :  { %4059 = vmatprep.subr.bf16.mxu0 %v4058_v2 }
 0xdb9   :  { %3746 = vmatmul.mubr.msk.f32.vlgmr.msra.gmra.mrb[10].mxu0 %vm188_vm2, %v1656_v0 }
 0xdba   :  { %4061 = vmatpush3.bf16.msra.mxu0 %v4058_v2  ;;  %3756 = vmatprep.mubr.msk.f32.mxu0 %vm188_vm2, %v1655_v63 }
 0xdbb   :  { %4063 = vmatprep.subr.bf16.mxu0 %v4062_v6 }
 0xdbe   :  { %4065 = vmatpush3.bf16.msra.mxu0 %v4062_v6 }
 0xdc1   :  { %3757 = vmatmul.mubr.msk.f32.vlgmr.msra.gmra.mrb[12].mxu0 %vm188_vm2, %v1656_v0 }
 0xe84   :  { %v3736_v24 = vpop.f32.mrb[8].mxu0 }
 0xe85   :  { %v1742_v9 = vpop.f32.mrb[9].mxu0  ;;  %v1748_v19 = vadd.f32 %v3736_v24, %v3267_v7 }
 0xe86   :  { %v1743_v10 = vadd.f32 %v3267_v7, %v1742_v9 }
 0xe87   :  { %v1928_v25 = vsel %vm497_vm5, %v1748_v19, 0.0  ;;  %v2041_v26 = vsel %vm4597_vm10, %v1748_v19, 0.0  ;;  %v2310_v28 = vsel %vm4550_vm6, %v1748_v19, 0.0  ;;  %v2500_v47 = vsel %vm4699_vm1, %v1748_v19, 0.0 }
 0xe88   :  { %v1927_v11 = vsel %vm497_vm5, %v1743_v10, 0.0  ;;  %v2040_v13 = vsel %vm4597_vm10, %v1743_v10, 0.0  ;;  %v2309_v27 = vsel %vm4550_vm6, %v1743_v10, 0.0  ;;  %v2499_v43 = vsel %vm4699_vm1, %v1743_v10, 0.0 }
 0xe89   :  { %3763 = vmatprep.mubr.msk.f32.mxu0 %vm188_vm2, %v1927_v11  ;;  %3770 = vmatprep.mubr.msk.f32.mxu1 %vm188_vm2, %v2040_v13 }
 0xe8c   :  { %v3747_v39 = vpop.f32.mrb[10].mxu0 }
 0xe8d   :  { %v1836_v15 = vadd.f32 %v3747_v39, %v3275_v14  ;;  %v1830_v16 = vpop.f32.mrb[11].mxu0 }
 0xe8e   :  { %v1831_v17 = vadd.f32 %v3275_v14, %v1830_v16 }
 0xe90   :  { %v4066_v18 = vpack.c.bf16 %v1836_v15, %v1831_v17 }
 0xe92   :  { %4068 = vmatprep.subr.msk.bf16.mxu0 %vm4569_vm7, %v4066_v18  ;;  %4074 = vmatprep.subr.msk.bf16.mxu1 %vm4569_vm7, %v4066_v18 }
 0xe93   :  { %4071 = vmatpush3.bf16.xpose.msk.msra.mxu0 %vm4569_vm7, %v4066_v18  ;;  %4077 = vmatpush3.bf16.xpose.msk.msra.mxu1 %vm4569_vm7, %v4066_v18 }
 0xe94   :  { %v3758_v44 = vpop.f32.mrb[12].mxu0  ;;  %4092 = vmatprep.subr.msk.bf16.mxu1 %vm4569_vm7, %v4066_v18 }
 0xe95   :  { %v1924_v54 = vadd.f32 %v3758_v44, %v3283_v53  ;;  %v1918_v20 = vpop.f32.mrb[13].mxu0 }
 0xe96   :  { %v1919_v21 = vadd.f32 %v3283_v53, %v1918_v20 }
 0xe98   :  { %v4938_v22 = vpack.c.bf16 %v1924_v54, %v1919_v21 }
 0xe9a   :  { %3764 = vmatmul.mubr.msk.f32.vlgmr.msra.gmra.mrb[14].mxu0 %vm188_vm2, %v1928_v25  ;;  %3771 = vmatmul.mubr.msk.f32.vlgmr.msra.gmra.mrb[16].mxu1 %vm188_vm2, %v2041_v26 }
 0xe9b   :  { %4080 = vmatprep.subr.msk.bf16.mxu0 %vm4612_vm11, %v4938_v22  ;;  %4095 = vmatpush3.bf16.xpose.msk.msra.mxu1 %vm4569_vm7, %v4066_v18 }
 0xe9c   :  { %4083 = vmatpush3.bf16.msk.msra.mxu0 %vm4612_vm11, %v4938_v22  ;;  %3791 = vmatprep.mubr.msk.f32.mxu1 %vm188_vm2, %v2309_v27 }
 0xe9d   :  { %4086 = vmatprep.subr.msk.bf16.mxu0 %vm4634_vm12, %v4938_v22  ;;  %4104 = vmatprep.subr.msk.bf16.mxu1 %vm4569_vm7, %v4066_v18 }
 0xea2   :  { %3792 = vmatmul.mubr.msk.f32.vlgmr.msra.gmra.mrb[18].mxu1 %vm188_vm2, %v2310_v28 }
 0xea3   :  { %4107 = vmatpush3.bf16.xpose.msk.msra.mxu1 %vm4569_vm7, %v4066_v18  ;;  %3805 = vmatprep.mubr.msk.f32.mxu1 %vm188_vm2, %v2499_v43 }
 0xeaa   :  { %3806 = vmatmul.mubr.msk.f32.vlgmr.msra.gmra.mrb[20].mxu1 %vm188_vm2, %v2500_v47 }
 0xf6d   :  { %v3765_v29 = vpop.f32.mrb[14].mxu0  ;;  %v3772_v30 = vpop.f32.mrb[16].mxu1 }
 0xf6e   :  { %v2122_v23 = vadd.f32 %v3772_v30, %v4654_v59  ;;  %v2009_v31 = vpop.f32.mrb[15].mxu0  ;;  %v2116_v32 = vpop.f32.mrb[17].mxu1  ;;  %v2015_v38 = vadd.f32 %v3765_v29, %v4654_v59 }
 0xf6f   :  { %v2117_v35 = vadd.f32 %v2116_v32, %v4648_v56  ;;  %v2010_v40 = vadd.f32 %v2009_v31, %v4648_v56 }
 0xf70   :  { %v2128_v33 = vsel %vm592_vm13, %v2122_v23, -inf  ;;  %v2021_v41 = vsel %vm592_vm13, %v2015_v38, -inf }
 0xf71   :  { %2129 = vmax.xlane.f32.xlu0 %v2128_v33  ;;  %v2125_v5 = vsel %vm592_vm13, %v2117_v35, -inf  ;;  %v2018_v45 = vsel %vm592_vm13, %v2010_v40, -inf }
 0xf72   :  { %2126 = vmax.xlane.f32.xlu1 %v2125_v5 }
 0xf75   :  { %v3793_v42 = vpop.f32.mrb[18].mxu1  ;;  %2022 = vmax.xlane.f32.xlu0 %v2021_v41 }
 0xf76   :  { %v2391_v46 = vadd.f32 %v3793_v42, %v4654_v59  ;;  %v2385_v48 = vpop.f32.mrb[19].mxu1  ;;  %2019 = vmax.xlane.f32.xlu1 %v2018_v45 }
 0xf77   :  { %v2386_v49 = vadd.f32 %v2385_v48, %v4648_v56 }
 0xf78   :  { %v2397_v51 = vsel %vm592_vm13, %v2391_v46, -inf }
 0xf79   :  { %2398 = vmax.xlane.f32.xlu0 %v2397_v51  ;;  %v2394_v52 = vsel %vm592_vm13, %v2386_v49, -inf }
 0xf7a   :  { %2395 = vmax.xlane.f32.xlu1 %v2394_v52 }
 0xf7d   :  { %v3807_v55 = vpop.f32.mrb[20].mxu1 }
 0xf7e   :  { %v2581_v57 = vadd.f32 %v3807_v55, %v4654_v59  ;;  %v2575_v58 = vpop.f32.mrb[21].mxu1 }
 0xf7f   :  { %v2576_v61 = vadd.f32 %v2575_v58, %v4648_v56 }
 0xf80   :  { %v2587_v62 = vsel %vm592_vm13, %v2581_v57, -inf }
 0xf81   :  { %2588 = vmax.xlane.f32.xlu0 %v2587_v62  ;;  %v2584_v63 = vsel %vm592_vm13, %v2576_v61, -inf }
 0xf82   :  { %2585 = vmax.xlane.f32.xlu1 %v2584_v63 }
 0xffe   :  { %v2130_v0 = vpop.xlane.xlu0 %2129 }
 0xfff   :  { %v2132_v37 = vsub.f32 %v2122_v23, %v2130_v0  ;;  %v2127_v36 = vpop.xlane.xlu1 %2126  ;;  %v3318_v0 = vld [vmem:[%s5184_s13 + $0x20] sm:$0xff] }
0x1000   :  { %v2131_v1 = vsub.f32 %v2117_v35, %v2127_v36 }
0x1001   :  { %v2135_v2 = vmul.f32 1.442695, %v2132_v37  ;;  %v3319_v37 = vld [vmem:[%s5184_s13 + $0x28] sm:$0xff] }
0x1002   :  { %v2133_v3 = vmul.f32 1.442695, %v2131_v1  ;;  %v2023_v4 = vpop.xlane.xlu0 %2022 }
0x1003   :  { %4234 = vpow2.f32 %v2135_v2  ;;  %v2025_v6 = vsub.f32 %v2015_v38, %v2023_v4  ;;  %v2020_v7 = vpop.xlane.xlu1 %2019  ;;  %v4114_v2 = vpack.c.bf16 %v3319_v37, %v3318_v0  ;;  %v3320_v4 = vld [vmem:[%s5184_s13 + $0x30] sm:$0xff] }
0x1004   :  { %4236 = vpow2.f32 %v2133_v3  ;;  %v2024_v59 = vsub.f32 %v2010_v40, %v2020_v7 }
0x1005   :  { %v2028_v24 = vmul.f32 1.442695, %v2025_v6  ;;  %v3321_v6 = vld [vmem:[%s5184_s13 + $0x38] sm:$0xff] }
0x1006   :  { %v2026_v56 = vmul.f32 1.442695, %v2024_v59  ;;  %v2399_v9 = vpop.xlane.xlu0 %2398  ;;  %v4118_v59 = vpack.c.bf16 %v3321_v6, %v3320_v4 }
0x1007   :  { %4238 = vpow2.f32 %v2028_v24  ;;  %v2401_v10 = vsub.f32 %v2391_v46, %v2399_v9  ;;  %v2396_v11 = vpop.xlane.xlu1 %2395  ;;  %v3323_v24 = vld [vmem:[%s5185_s14 + $0x1] ss:$0 sm:$0xff] }
0x1008   :  { %4240 = vpow2.f32 %v2026_v56  ;;  %v2400_v13 = vsub.f32 %v2386_v49, %v2396_v11 }
0x1009   :  { %v2404_v14 = vmul.f32 1.442695, %v2401_v10 }
0x100a   :  { %v2402_v39 = vmul.f32 1.442695, %v2400_v13 }
0x100b   :  { %4242 = vpow2.f32 %v2404_v14 }
0x100c   :  { %4244 = vpow2.f32 %v2402_v39 }
0x100d   :  { %v4235_v15 = vpop.eup %4234 }
0x100e   :  { %v4237_v16 = vpop.eup %4236  ;;  %v2589_v17 = vpop.xlane.xlu0 %2588  ;;  %v2140_v18 = vsel %vm592_vm13, %v4235_v15, 0.0 }
0x100f   :  { %v2591_v53 = vsub.f32 %v2581_v57, %v2589_v17  ;;  %2141 = vadd.xlane.f32.xlu0 %v2140_v18  ;;  %v2586_v44 = vpop.xlane.xlu1 %2585  ;;  %v2137_v19 = vsel %vm592_vm13, %v4237_v16, 0.0 }
0x1010   :  { %v2590_v54 = vsub.f32 %v2576_v61, %v2586_v44  ;;  %2138 = vadd.xlane.f32.xlu1 %v2137_v19 }
0x1011   :  { %v4239_v20 = vpop.eup %4238  ;;  %v2594_v21 = vmul.f32 1.442695, %v2591_v53 }
0x1012   :  { %v4241_v25 = vpop.eup %4240  ;;  %v2592_v26 = vmul.f32 1.442695, %v2590_v54  ;;  %v2033_v27 = vsel %vm592_vm13, %v4239_v20, 0.0 }
0x1013   :  { %4246 = vpow2.f32 %v2594_v21  ;;  %2034 = vadd.xlane.f32.xlu0 %v2033_v27  ;;  %v2030_v28 = vsel %vm592_vm13, %v4241_v25, 0.0  ;;  %v3330_v21 = vld [vmem:[%s5188_s17 + $0x20] sm:$0xff]  ;;  %v3332_v27 = vld [vmem:[%s5188_s17 + $0x30] sm:$0xff] }
0x1014   :  { %4248 = vpow2.f32 %v2592_v26  ;;  %2031 = vadd.xlane.f32.xlu1 %v2030_v28  ;;  %v3333_v28 = vld [vmem:[%s5188_s17 + $0x38] sm:$0xff] }
0x1015   :  { %v4243_v43 = vpop.eup %4242 }
0x1016   :  { %v4245_v47 = vpop.eup %4244  ;;  %v2409_v29 = vsel %vm592_vm13, %v4243_v43, 0.0 }
0x1017   :  { %2410 = vadd.xlane.f32.xlu0 %v2409_v29  ;;  %v2406_v30 = vsel %vm592_vm13, %v4245_v47, 0.0  ;;  %v3339_v29 = vld [vmem:[%s5190_s19 + $0x88] sm:$0xff] }
0x1018   :  { %2407 = vadd.xlane.f32.xlu1 %v2406_v30  ;;  %v3340_v30 = vld [vmem:[%s5190_s19 + $0x90] sm:$0xff] }
0x101d   :  { %v4247_v23 = vpop.eup %4246 }
0x101e   :  { %v4249_v31 = vpop.eup %4248  ;;  %v2599_v32 = vsel %vm592_vm13, %v4247_v23, 0.0 }
0x101f   :  { %2600 = vadd.xlane.f32.xlu0 %v2599_v32  ;;  %v2596_v35 = vsel %vm592_vm13, %v4249_v31, 0.0 }
0x1020   :  { %2597 = vadd.xlane.f32.xlu1 %v2596_v35  ;;  %v3342_v35 = vld [vmem:[%s5190_s19 + $0xa0] sm:$0xff] }
0x109c   :  { %v2142_v38 = vpop.xlane.xlu0 %2141 }
0x109d   :  { %4250 = vrcp.f32 %v2142_v38  ;;  %v2139_v33 = vpop.xlane.xlu1 %2138  ;;  %v3343_v38 = vld [vmem:[%s5190_s19 + $0xa8] sm:$0xff] }
0x109e   :  { %4252 = vrcp.f32 %v2139_v33  ;;  %v4138_v33 = vpack.c.bf16 %v3343_v38, %v3342_v35 }
0x10a0   :  { %v2035_v5 = vpop.xlane.xlu0 %2034 }
0x10a1   :  { %v2032_v40 = vpop.xlane.xlu1 %2031 }
0x10a2   :  { %4254 = vrcp.f32 %v2032_v40  ;;  %v3344_v40 = vld [vmem:[%s5190_s19 + $0xb0] sm:$0xff] }
0x10a3   :  { %4256 = vrcp.f32 %v2035_v5  ;;  %v3345_v5 = vld [vmem:[%s5190_s19 + $0xb8] sm:$0xff] }
0x10a4   :  { %v2411_v49 = vpop.xlane.xlu0 %2410 }
0x10a5   :  { %v2408_v41 = vpop.xlane.xlu1 %2407 }
0x10a6   :  { %4258 = vrcp.f32 %v2408_v41  ;;  %v4142_v41 = vpack.c.bf16 %v3345_v5, %v3344_v40 }
0x10a7   :  { %v4251_v42 = vpop.eup %4250  ;;  %4260 = vrcp.f32 %v2411_v49  ;;  %v3349_v49 = vld [vmem:[%s5190_s19 + $0xd8] sm:$0xff] }
0x10a8   :  { %v4253_v45 = vpop.eup %4252  ;;  %v2146_v48 = vmul.f32 %v4251_v42, %v4235_v15  ;;  %v3346_v42 = vld [vmem:[%s5190_s19 + $0xc0] sm:$0xff] }
0x10a9   :  { %v2145_v46 = vmul.f32 %v4253_v45, %v4237_v16  ;;  %v3347_v45 = vld [vmem:[%s5190_s19 + $0xc8] sm:$0xff] }
0x10ab   :  { %3777 = vmatprep.mubr.msk.f32.mxu0 %vm592_vm13, %v2145_v46  ;;  %v4146_v46 = vpack.c.bf16 %v3347_v45, %v3346_v42 }
0x10ac   :  { %v4255_v51 = vpop.eup %4254  ;;  %3778 = vmatmul.mubr.msk.f32.vlgmr.msra.gmra.mrb[16].mxu0 %vm592_vm13, %v2146_v48  ;;  %v2601_v62 = vpop.xlane.xlu0 %2600  ;;  %v3348_v48 = vld [vmem:[%s5190_s19 + $0xd0] sm:$0xff] }
0x10ad   :  { %4089 = vmatpush3.bf16.msk.msra.mxu0 %vm4634_vm12, %v4938_v22  ;;  %v2598_v52 = vpop.xlane.xlu1 %2597  ;;  %v2038_v55 = vmul.f32 %v4255_v51, %v4241_v25  ;;  %v4257_v57 = vpop.eup %4256  ;;  %v3331_v25 = vld [vmem:[%s5188_s17 + $0x28] sm:$0xff]  ;;  %v4150_v51 = vpack.c.bf16 %v3349_v49, %v3348_v48 }
0x10ae   :  { %4098 = vmatprep.subr.msk.bf16.mxu0 %vm4677_vm14, %v4938_v22  ;;  %4262 = vrcp.f32 %v2598_v52  ;;  %v2039_v61 = vmul.f32 %v4257_v57, %v4239_v20  ;;  %v4122_v26 = vpack.c.bf16 %v3331_v25, %v3330_v21  ;;  %v3350_v52 = vld [vmem:[%s5190_s19 + $0xe0] sm:$0xff]  ;;  %v3104_v25 = vld [vmem:[%s5192_s21 + $0x8] sm:$0xff] }
0x10af   :  { %3784 = vmatprep.mubr.msk.f32.mxu0 %vm592_vm13, %v2038_v55  ;;  %4264 = vrcp.f32 %v2601_v62  ;;  %v3351_v55 = vld [vmem:[%s5190_s19 + $0xe8] sm:$0xff]  ;;  %v3103_v21 = vld [vmem:[%s5192_s21] sm:$0xff] }
0x10b0   :  { %v4259_v58 = vpop.eup %4258  ;;  %4123 = vmatprep.subr.bf16.mxu1 %v4122_v26  ;;  %v4154_v57 = vpack.c.bf16 %v3351_v55, %v3350_v52 }
0x10b1   :  { %v2414_v63 = vmul.f32 %v4259_v58, %v4245_v47  ;;  %v4261_v50 = vpop.eup %4260  ;;  %4125 = vmatpush3.bf16.msra.mxu1 %v4122_v26  ;;  %v3338_v47 = vld [vmem:[%s5190_s19 + $0x80] sm:$0xff] }
0x10b2   :  { %v2415_v1 = vmul.f32 %v4261_v50, %v4243_v43  ;;  %v4126_v43 = vpack.c.bf16 %v3333_v28, %v3332_v27  ;;  %v3029_v27 = vld [vmem:[%s5236_s4] sm:$0x3]  ;;  %v4166_v28 = vpack.c.bf16 %v3104_v25, %v3103_v21 }
0x10b4   :  { %3785 = vmatmul.mubr.msk.f32.vlgmr.msra.gmra.mrb[16].mxu0 %vm592_vm13, %v2039_v61  ;;  %4127 = vmatprep.subr.bf16.mxu1 %v4126_v43 }
0x10b5   :  { %4101 = vmatpush3.bf16.msk.msra.mxu0 %vm4677_vm14, %v4938_v22  ;;  %3798 = vmatprep.mubr.msk.f32.mxu0 %vm592_vm13, %v2414_v63 }
0x10b6   :  { %4110 = vmatprep.subr.msk.bf16.mxu0 %vm4710_vm3, %v4938_v22  ;;  %4129 = vmatpush3.bf16.msra.mxu1 %v4126_v43 }
0x10b8   :  { %v4263_v36 = vpop.eup %4262 }
0x10b9   :  { %v2604_v60 = vmul.f32 %v4263_v36, %v4249_v31  ;;  %v4265_v3 = vpop.eup %4264  ;;  %v3341_v31 = vld [vmem:[%s5190_s19 + $0x98] sm:$0xff]  ;;  %v3328_v36 = vld [vmem:[%s5186_s15 + $0x1] ss:$0 sm:$0xff] }
0x10ba   :  { %v2605_v7 = vmul.f32 %v4265_v3, %v4247_v23  ;;  %v4130_v23 = vpack.c.bf16 %v3339_v29, %v3338_v47  ;;  %v4134_v32 = vpack.c.bf16 %v3341_v31, %v3340_v30  ;;  %v3329_v3 = vld [vmem:[%s5187_s16 + $0x1] ss:$0 sm:$0xff]  ;;  %v3357_v30 = vld [vmem:[%s5193_s22] ss:$0 sm:$0xff] }
0x10bc   :  { %3799 = vmatmul.mubr.msk.f32.vlgmr.msra.gmra.mrb[16].mxu0 %vm592_vm13, %v2415_v1 }
0x10bd   :  { %4113 = vmatpush3.bf16.msk.msra.mxu0 %vm4710_vm3, %v4938_v22  ;;  %3812 = vmatprep.mubr.msk.f32.mxu0 %vm592_vm13, %v2604_v60 }
0x10be   :  { %4115 = vmatprep.subr.bf16.mxu0 %v4114_v2 }
0x10c4   :  { %3813 = vmatmul.mubr.msk.f32.vlgmr.msra.gmra.mrb[16].mxu0 %vm592_vm13, %v2605_v7 }
0x10c5   :  { %4117 = vmatpush3.bf16.msra.mxu0 %v4114_v2 }
0x10c6   :  { %4119 = vmatprep.subr.bf16.mxu0 %v4118_v59 }
0x10c9   :  { %4121 = vmatpush3.bf16.msra.mxu0 %v4118_v59 }
0x10ca   :  { %4131 = vmatprep.subr.bf16.mxu0 %v4130_v23 }
0x1197   :  { %v3814_v8 = vpop.f32.mrb[16].mxu0 }
0x1198   :  { %v2678_v22 = vpop.f32.mrb[17].mxu0 }
0x1199   :  { %3823 = vmatprep.mubr.msk.f32.mxu0 %vm188_vm2, %v2678_v22  ;;  %v3353_v22 = vld [vmem:[%s5190_s19 + $0xf8] sm:$0xff] }
0x119a   :  { %3824 = vmatmul.mubr.msk.f32.vlgmr.msra.gmra.mrb[18].mxu0 %vm188_vm2, %v3814_v8  ;;  %v3352_v8 = vld [vmem:[%s5190_s19 + $0xf0] sm:$0xff] }
0x119b   :  { %4133 = vmatpush3.bf16.msra.mxu0 %v4130_v23 }
0x119c   :  { %4135 = vmatprep.subr.bf16.mxu0 %v4134_v32 }
0x119f   :  { %4137 = vmatpush3.bf16.msra.mxu0 %v4134_v32 }
0x11a0   :  { %4139 = vmatprep.subr.bf16.mxu0 %v4138_v33 }
0x11a3   :  { %4141 = vmatpush3.bf16.msra.mxu0 %v4138_v33 }
0x11a4   :  { %4143 = vmatprep.subr.bf16.mxu0 %v4142_v41 }
0x11a7   :  { %4145 = vmatpush3.bf16.msra.mxu0 %v4142_v41 }
0x11a8   :  { %4147 = vmatprep.subr.bf16.mxu0 %v4146_v46 }
0x11ab   :  { %4149 = vmatpush3.bf16.msra.mxu0 %v4146_v46 }
0x11ac   :  { %4151 = vmatprep.subr.bf16.mxu0 %v4150_v51 }
0x11af   :  { %4153 = vmatpush3.bf16.msra.mxu0 %v4150_v51 }
0x11b0   :  { %4155 = vmatprep.subr.bf16.mxu0 %v4154_v57 }
0x11b3   :  { %4157 = vmatpush3.bf16.msra.mxu0 %v4154_v57 }
0x126d   :  { %v3825_v56 = vpop.f32.mrb[18].mxu0 }
0x126e   :  { %v2780_v9 = vadd.f32 %v3825_v56, %v3323_v24  ;;  %v2774_v10 = vpop.f32.mrb[19].mxu0  ;;  %v3335_v56 = vld [vmem:[%s5235_s30 + $0x1] ss:$0 sm:$0xff] }
0x126f   :  { %v2775_v11 = vadd.f32 %v3323_v24, %v2774_v10  ;;  %v4158_v24 = vpack.c.bf16 %v3353_v22, %v3352_v8 }
0x1270   :  { %v5038_v13 = vadd.f32 %v2780_v9, %v4852_v34 }
0x1271   :  { %v5041_v14 = vadd.f32 %v2775_v11, %v4855_v12  ;;  %4159 = vmatprep.subr.bf16.mxu0 %v4158_v24 }
0x1272   :  { %v2792_v39 = vsel %vm188_vm2, %v5038_v13, 0.0  ;;  %4161 = vmatpush3.bf16.msra.mxu0 %v4158_v24 }
0x1273   :  { %2793 = vadd.xlane.f32.xlu0 %v2792_v39  ;;  %v2789_v15 = vsel %vm188_vm2, %v5041_v14, 0.0 }
0x1274   :  { %2790 = vadd.xlane.f32.xlu1 %v2789_v15 }
0x1300   :  { %v2794_v16 = vpop.xlane.xlu0 %2793 }
0x1301   :  { %v2796_v17 = vmul.f32 0.03125, %v2794_v16  ;;  %v2791_v18 = vpop.xlane.xlu1 %2790 }
0x1302   :  { %v2795_v53 = vmul.f32 0.03125, %v2791_v18  ;;  %v4298_v18 = vmov 0.0  }
0x1303   :  { %v5048_v44 = vsub.f32 %v5038_v13, %v2796_v17  ;;  %v4296_v17 = vmov 0.0|0.0  }
0x1304   :  { %v5051_v34 = vsub.f32 %v5041_v14, %v2795_v53  ;;  %4162 = vmatprep.subr.bf16.mxu1 %v4296_v17  ;;  %v3355_v53 = vld [vmem:[%s5191_s20 + $0x1] ss:$0 sm:$0xff] }
0x1305   :  { %v2800_v12 = vmul.f32 %v5048_v44, %v5048_v44 }
0x1306   :  { %v2799_v19 = vmul.f32 %v5051_v34, %v5051_v34 }
0x1307   :  { %v2804_v54 = vsel %vm188_vm2, %v2800_v12, 0.0 }
0x1308   :  { %2805 = vadd.xlane.f32.xlu0 %v2804_v54  ;;  %v2801_v20 = vsel %vm188_vm2, %v2799_v19, 0.0 }
0x1309   :  { %2802 = vadd.xlane.f32.xlu1 %v2801_v20 }
0x1395   :  { %v2806_v58 = vpop.xlane.xlu0 %2805 }
0x1396   :  { %v2808_v61 = vmul.f32 0.03125, %v2806_v58  ;;  %v2803_v62 = vpop.xlane.xlu1 %2802 }
0x1397   :  { %v2807_v63 = vmul.f32 0.03125, %v2803_v62 }
0x1398   :  { %v2810_v50 = vadd.f32 1e-05, %v2808_v61 }
0x1399   :  { %v2809_v0 = vadd.f32 1e-05, %v2807_v63 }
0x139a   :  { %4266 = vrsqrt.f32 %v2810_v50 }
0x139b   :  { %4268 = vrsqrt.f32 %v2809_v0 }
0x13a4   :  { %v4267_v37 = vpop.eup %4266 }
0x13a5   :  { %v4269_v1 = vpop.eup %4268  ;;  %v2814_v2 = vmul.f32 %v4267_v37, %v5048_v44 }
0x13a6   :  { %v2813_v60 = vmul.f32 %v4269_v1, %v5051_v34 }
0x13a7   :  { %v2822_v4 = vmul.f32 %v3328_v36, %v2814_v2 }
0x13a8   :  { %v2821_v6 = vmul.f32 %v3328_v36, %v2813_v60 }
0x13a9   :  { %v2830_v59 = vadd.f32 %v3329_v3, %v2822_v4 }
0x13aa   :  { %v2829_v7 = vadd.f32 %v3329_v3, %v2821_v6 }
0x13ac   :  { %3834 = vmatprep.mubr.msk.f32.mxu1 %vm188_vm2, %v2829_v7 }
0x13ad   :  { %3835 = vmatmul.mubr.msk.f32.vlgmr.msra.gmra.mrb[22].mxu1 %vm188_vm2, %v2830_v59 }
0x13ae   :  { %3876 = vmatprep.mubr.msk.f32.mxu1 %vm4297_vm4, %v4298_v18 }
0x1480   :  { %v3836_v9 = vpop.f32.mrb[22].mxu1 }
0x1481   :  { %v2922_v10 = vadd.f32 %v3836_v9, %v3335_v56  ;;  %v2916_v11 = vpop.f32.mrb[23].mxu1 }
0x1482   :  { %v2917_v39 = vadd.f32 %v3335_v56, %v2916_v11 }
0x1483   :  { %v2926_v16 = vmax.f32 %v2922_v10, 0.0 }
0x1484   :  { %v2925_v15 = vmax.f32 %v2917_v39, 0.0 }
0x1486   :  { %3869 = vmatprep.mubr.f32.mxu0 %v2925_v15 }
0x1487   :  { %3870 = vmatmul.mubr.f32.vlgmr.msra.gmra.mrb[20].mxu0 %v2926_v16 }
0x155a   :  { %v3871_v44 = vpop.f32.mrb[20].mxu0 }
0x155b   :  { %v3024_v34 = vadd.f32 %v3871_v44, %v3355_v53  ;;  %v3018_v12 = vpop.f32.mrb[21].mxu0 }
0x155c   :  { %v3019_v19 = vadd.f32 %v3355_v53, %v3018_v12 }
0x155d   :  { %v3028_v54 = vadd.f32 %v3024_v34, %v5038_v13  ;;  %v3105_v13 = vld [vmem:[%s5192_s21 + $0x10] sm:$0xff] }
0x155e   :  { %v3027_v20 = vadd.f32 %v3019_v19, %v5041_v14  ;;  %v3106_v14 = vld [vmem:[%s5192_s21 + $0x18] sm:$0xff]  ;;  %s4270_s21 = scalar_lea.vmem %s3195_s26, 32 }
0x155f   :  { %v4169_v43 = vpack.c.bf16 %v3106_v14, %v3105_v13  ;;  %p4271_p0 = scmp.ne.s32.totalorder %s3195_s26, %s4270_s21  ;;  %p4276_p2 = scmp.lt.s32.totalorder %s4270_s21, %s4270_s21 }
0x1560   :  { %v4163_v26 = vpack.c.bf16 %v3028_v54, %v3027_v20 }
0x1561   :  { %p4277_p3 = por %p4276_p2, %p4275_p1 }
0x1562   :  { %4164 = vmatpush3.bf16.msra.mxu1 %v4163_v26 }
0x1563   :  { %4165 = vmatprep.subr.bf16.mxu1 %v4296_v17  ;;  %p4278_p4 = pnand %p4277_p3, %p4271_p0 }
0x1565   :  { %3877 = vmatmul.mubr.msk.f32.vlgmr.msra.gmra.mrb[24].mxu1 %vm592_vm13, %v3029_v27 }
0x1566   :  { %4167 = vmatpush3.bf16.msra.mxu1 %v4166_v28  ;;  %3887 = vmatprep.mubr.msk.f32.mxu1 %vm4297_vm4, %v4298_v18 }
0x1567   :  { %4168 = vmatprep.subr.bf16.mxu1 %v4296_v17 }
0x156a   :  { %4170 = vmatpush3.bf16.msra.mxu1 %v4169_v43 }
0x1638   :  { %v3099_v47 = vpop.f32.mrb[24].mxu1 }
0x1639   :  { %v3878_v29 = vpop.f32.mrb[25].mxu1  ;;  %3888 = vmatmul.mubr.msk.f32.vlgmr.msra.gmra.mrb[26].mxu1 %vm188_vm2, %v3099_v47 }
0x170c   :  { %v3183_v23 = vpop.f32.mrb[26].mxu1 }
0x170d   :  { %v3184_v31 = vadd.f32 %v3357_v30, %v3183_v23  ;;  %v3889_v32 = vpop.f32.mrb[27].mxu1 }
0x170f   :  { %3187 = vst [vmem:[#allocation2] sm:$0x3] %v3184_v31 }
0x1710   :  { %4281 = shalt.err (!%p4278_p4)
}
0x1711   :  { %s4282_s2 = scalar_lea.hbm %s5194_s23, 32 }
0x1712   :  { %p4283_p5 = scmp.ne.s32.totalorder %s5194_s23, %s4282_s2  ;;  %p4286_p6 = scmp.lt.u32.totalorder %s4282_s2, %s5194_s23 }
0x1714   :  { %p4288_p7 = pnand %p4286_p6, %p4283_p5 }
0x1716   :  { %4291 = shalt.err (!%p4288_p7)
}
0x1717   :  { %3197 = dma.vmem_to_hbm [thread:$0]  %s3195_s26, 32, %s5194_s23, [#allocation3]  }
0x1718   :  { %4292 = dma.done.wait [#allocation3], 32  }
0x1719   :  { %4293 = vsyncadd [#allocation3], 4294967264 }
0x171a   :  { %3201 = vsyncpa [#allocation3], 1 }

</bundles_post_ra>
